<compile_context>
chip_gen: v6e
topology: v6e:2x2x1
jax: 0.10.0
libtpu: 0.0.40
codegen_flags: <defaults>
</compile_context>

<pallas_src>
import functools
import math

import numpy as np
import jax
import jax.numpy as jnp
from jax.experimental import pallas as pl
from jax.experimental.pallas import tpu as pltpu


def _round_up(x, m):
    return ((x + m - 1) // m) * m


def _geom_attn_kernel(q_ref, k_ref, v_ref, o_ref, ssum_ref,
                      m_ref, l_ref, acc_ref, *, alpha, scale):
    qi = pl.program_id(2)
    kv = pl.program_id(3)
    n_kv = pl.num_programs(3)

    @pl.when(kv == 0)
    def _init():
        m_ref[...] = jnp.full_like(m_ref, -jnp.inf)
        l_ref[...] = jnp.zeros_like(l_ref)
        acc_ref[...] = jnp.zeros_like(acc_ref)

    @pl.when((qi == 0) & (kv == 0))
    def _init_sum():
        ssum_ref[...] = jnp.zeros_like(ssum_ref)

    q = q_ref[...]                                   # (TL, E)
    k = k_ref[...]                                   # (TS, E)
    v = v_ref[...]                                   # (TS, D)

    dims = (((1,), (1,)), ((), ()))
    dot = jax.lax.dot_general(q, k, dims,
                              preferred_element_type=jnp.float32)        # (TL, TS)
    qf = q.astype(jnp.float32)
    kf = k.astype(jnp.float32)
    qn2 = jnp.sum(qf * qf, axis=-1, keepdims=True)                        # (TL, 1)
    kn2 = jax.lax.dot_general(jnp.ones((1, k.shape[1]), jnp.float32),
                              kf * kf, dims,
                              preferred_element_type=jnp.float32)         # (1, TS)
    # wedge-norm term (kept fully in f32 -- cancellation prone).
    wedge2 = jnp.maximum(qn2 * kn2 - dot * dot, 0.0)
    wedge = jnp.sqrt(wedge2 + 1e-8)
    s = ((1.0 - alpha) * dot + alpha * wedge) * scale                     # (TL, TS)

    # running sum of |scores| (only statistic the module returns).
    ssum_ref[...] += jnp.sum(jnp.abs(s))

    # online softmax accumulation (flash pattern).
    m_prev = m_ref[...]
    m_new = jnp.maximum(m_prev, jnp.max(s, axis=-1, keepdims=True))
    a = jnp.exp(m_prev - m_new)
    p = jnp.exp(s - m_new)
    l_ref[...] = a * l_ref[...] + jnp.sum(p, axis=-1, keepdims=True)
    acc_ref[...] = a * acc_ref[...] + jnp.dot(p.astype(v.dtype), v,
                                              preferred_element_type=jnp.float32)
    m_ref[...] = m_new

    @pl.when(kv == n_kv - 1)
    def _finalize():
        inv_l = pl.reciprocal(l_ref[...], approx=True)
        o_ref[...] = (acc_ref[...] * inv_l).astype(o_ref.dtype)


def geom_attention(queries, keys, values, *, alpha=1.0, scale=None,
                   block_q=128, block_kv=128):
    """queries [B,L,H,E], keys [B,S,H,E], values [B,S,H,D] ->
       (V [B,L,H,D], scores.abs().mean() scalar)."""
    B, L, H, E = queries.shape
    _, S, _, D = values.shape
    assert keys.shape == (B, S, H, E), keys.shape
    sc = float(scale) if scale is not None else 1.0 / math.sqrt(E)

    # Zero-pad head dims to a multiple of 128: exact for dots/norms, lane-dense blocks.
    Ep = _round_up(E, 128)
    Dp = _round_up(D, 128)
    if Ep != E:
        pad = ((0, 0), (0, 0), (0, 0), (0, Ep - E))
        queries = jnp.pad(queries, pad)
        keys = jnp.pad(keys, pad)
    if Dp != D:
        values = jnp.pad(values, ((0, 0), (0, 0), (0, 0), (0, Dp - D)))

    # Tile sizes (fall back to full extent if not divisible).
    TL = block_q if L % block_q == 0 else L
    TS = block_kv if S % block_kv == 0 else S
    nq, nkv = L // TL, S // TS

    # Free reshapes: head selection happens in the BlockSpec index_map (no HBM transpose).
    qf = queries.reshape(B, L, H * Ep)
    kf = keys.reshape(B, S, H * Ep)
    vf = values.reshape(B, S, H * Dp)

    kernel = functools.partial(_geom_attn_kernel, alpha=float(alpha), scale=sc)

    o_f, ssum = pl.pallas_call(
        kernel,
        out_shape=(jax.ShapeDtypeStruct((B, L, H * Dp), queries.dtype),
                   jax.ShapeDtypeStruct((B, H, 1, 128), jnp.float32)),
        grid=(B, H, nq, nkv),
        in_specs=[
            pl.BlockSpec((None, TL, Ep), lambda b, h, qi, kv: (b, qi, h)),
            pl.BlockSpec((None, TS, Ep), lambda b, h, qi, kv: (b, kv, h)),
            pl.BlockSpec((None, TS, Dp), lambda b, h, qi, kv: (b, kv, h)),
        ],
        out_specs=(
            pl.BlockSpec((None, TL, Dp), lambda b, h, qi, kv: (b, qi, h)),
            pl.BlockSpec((None, None, 1, 128), lambda b, h, qi, kv: (b, h, 0, 0)),
        ),
        scratch_shapes=[
            pltpu.VMEM((TL, 1), jnp.float32),    # running max m
            pltpu.VMEM((TL, 1), jnp.float32),    # running denom l
            pltpu.VMEM((TL, Dp), jnp.float32),   # output accumulator
        ],
        compiler_params=pltpu.CompilerParams(
            dimension_semantics=("parallel", "parallel", "arbitrary", "arbitrary")),
    )(qf, kf, vf)

    V = o_f.reshape(B, L, H, Dp)
    if Dp != D:
        V = V[..., :D]
    attn_abs_mean = jnp.sum(ssum[:, :, 0, 0]) / float(B * H * L * S)
    return V, attn_abs_mean


# ----------------------------- pure-JAX reference -----------------------------
def reference_geom_attention(q, k, v, alpha, scale=None):
    B, L, H, E = q.shape
    sc = scale if scale is not None else 1.0 / math.sqrt(E)
    dot = jnp.einsum('blhe,bshe->bhls', q, k)
    qn2 = jnp.transpose(jnp.sum(q ** 2, axis=-1), (0, 2, 1))[..., None]      # (B,H,L,1)
    kn2 = jnp.transpose(jnp.sum(k ** 2, axis=-1), (0, 2, 1))[:, :, None, :]  # (B,H,1,S)
    wedge = jnp.sqrt(jnp.maximum(qn2 * kn2 - dot ** 2, 0.0) + 1e-8)
    scores = ((1.0 - alpha) * dot + alpha * wedge) * sc
    A = jax.nn.softmax(scores, axis=-1)
    V = jnp.einsum('bhls,bshd->blhd', A, v)
    return V, jnp.mean(jnp.abs(scores))


# ------------------------------------ main ------------------------------------
if __name__ == "__main__":
    B, L, S, H, E, D = 2, 256, 256, 4, 128, 128
    key = jax.random.PRNGKey(0)
    kq, kk, kv_key = jax.random.split(key, 3)
    q_in = jax.random.normal(kq, (B, L, H, E), jnp.float32)
    k_in = jax.random.normal(kk, (B, S, H, E), jnp.float32)
    v_in = jax.random.normal(kv_key, (B, S, H, D), jnp.float32)

    for alpha in (1.0, 0.5):   # module default alpha=1.0; also exercise the mixed term
        V, s_mean = geom_attention(q_in, k_in, v_in, alpha=alpha)
        V = jax.block_until_ready(V)
        s_mean = jax.block_until_ready(s_mean)

        V_ref, s_mean_ref = reference_geom_attention(q_in, k_in, v_in, alpha)
        V_ref = jax.block_until_ready(V_ref)

        assert V.shape == (B, L, H, D), V.shape
        v_err = float(jnp.max(jnp.abs(V - V_ref)))
        assert np.allclose(np.asarray(V), np.asarray(V_ref), atol=2e-2, rtol=2e-2), \
            ("V mismatch", alpha, v_err)
        assert np.allclose(float(s_mean), float(s_mean_ref), atol=2e-2, rtol=2e-2), \
            ("scores.abs().mean() mismatch", alpha, float(s_mean), float(s_mean_ref))

    print("KERNEL_OK")
</pallas_src>

<mosaic_0001>
module attributes {stable_mosaic.version = 11 : i64} {
  func.func @_geom_attn_kernel(%arg0: i32, %arg1: i32, %arg2: i32, %arg3: i32, %arg4: memref<1x128x128xf32, #tpu.memory_space<vmem>>, %arg5: memref<1x128x128xf32, #tpu.memory_space<vmem>>, %arg6: memref<1x128x128xf32, #tpu.memory_space<vmem>>, %arg7: memref<1x128x128xf32, #tpu.memory_space<vmem>>, %arg8: memref<1x1x1x128xf32, #tpu.memory_space<vmem>>, %arg9: memref<128x1xf32, #tpu.memory_space<vmem>>, %arg10: memref<128x1xf32, #tpu.memory_space<vmem>>, %arg11: memref<128x128xf32, #tpu.memory_space<vmem>>) attributes {dimension_semantics = [#tpu.dimension_semantics<parallel>, #tpu.dimension_semantics<parallel>, #tpu.dimension_semantics<arbitrary>, #tpu.dimension_semantics<arbitrary>], iteration_bounds = array<i64: 2, 4, 2, 2>, scalar_prefetch = 0 : i64, scratch_operands = 3 : i64, tpu.core_type = #tpu.core_type<tc>, window_params = [{transform_indices = @transform_0, window_bounds = array<i64: 1, 128, 128>}, {transform_indices = @transform_1, window_bounds = array<i64: 1, 128, 128>}, {transform_indices = @transform_2, window_bounds = array<i64: 1, 128, 128>}, {transform_indices = @transform_3, window_bounds = array<i64: 1, 128, 128>}, {transform_indices = @transform_4, window_bounds = array<i64: 1, 1, 1, 128>}]} {
    %c0_i32 = arith.constant 0 : i32
    %0 = arith.cmpi eq, %arg3, %c0_i32 : i32
    %1 = arith.extui %0 : i1 to i32
    %c0_i32_0 = arith.constant 0 : i32
    %2 = arith.cmpi ne, %1, %c0_i32_0 : i32
    scf.if %2 {
      %cst_45 = arith.constant 0xFF800000 : f32
      %75 = vector.broadcast %cst_45 : f32 to vector<128x1xf32>
      %c0_46 = arith.constant 0 : index
      %c0_47 = arith.constant 0 : index
      %76 = vector.load %arg9[%c0_46, %c0_47] : memref<128x1xf32, #tpu.memory_space<vmem>>, vector<128x1xf32>
      tpu.vector_store %arg9[%c0_46, %c0_47], %75 {strides = array<i32>} : memref<128x1xf32, #tpu.memory_space<vmem>>, vector<128x1xf32>,
      %cst_48 = arith.constant 0.000000e+00 : f32
      %77 = vector.broadcast %cst_48 : f32 to vector<128x1xf32>
      %c0_49 = arith.constant 0 : index
      %c0_50 = arith.constant 0 : index
      %78 = vector.load %arg10[%c0_49, %c0_50] : memref<128x1xf32, #tpu.memory_space<vmem>>, vector<128x1xf32>
      tpu.vector_store %arg10[%c0_49, %c0_50], %77 {strides = array<i32>} : memref<128x1xf32, #tpu.memory_space<vmem>>, vector<128x1xf32>,
      %cst_51 = arith.constant 0.000000e+00 : f32
      %79 = vector.broadcast %cst_51 : f32 to vector<128x128xf32>
      %c0_52 = arith.constant 0 : index
      %c0_53 = arith.constant 0 : index
      %80 = vector.load %arg11[%c0_52, %c0_53] : memref<128x128xf32, #tpu.memory_space<vmem>>, vector<128x128xf32>
      tpu.vector_store %arg11[%c0_52, %c0_53], %79 {strides = array<i32>} : memref<128x128xf32, #tpu.memory_space<vmem>>, vector<128x128xf32>,
    } else {
    }
    %c0_i32_1 = arith.constant 0 : i32
    %3 = arith.cmpi eq, %arg2, %c0_i32_1 : i32
    %c0_i32_2 = arith.constant 0 : i32
    %4 = arith.cmpi eq, %arg3, %c0_i32_2 : i32
    %5 = arith.andi %3, %4 : i1
    %6 = arith.extui %5 : i1 to i32
    %c0_i32_3 = arith.constant 0 : i32
    %7 = arith.cmpi ne, %6, %c0_i32_3 : i32
    scf.if %7 {
      %cst_45 = arith.constant 0.000000e+00 : f32
      %75 = vector.broadcast %cst_45 : f32 to vector<1x128xf32>
      %c0_46 = arith.constant 0 : index
      %c0_47 = arith.constant 0 : index
      %c0_48 = arith.constant 0 : index
      %c0_49 = arith.constant 0 : index
      %76 = vector.load %arg8[%c0_46, %c0_47, %c0_48, %c0_49] : memref<1x1x1x128xf32, #tpu.memory_space<vmem>>, vector<1x1x1x128xf32>
      %77 = vector.shape_cast %76 : vector<1x1x1x128xf32> to vector<1x128xf32>
      %78 = vector.shape_cast %75 : vector<1x128xf32> to vector<1x1x1x128xf32>
      tpu.vector_store %arg8[%c0_46, %c0_47, %c0_48, %c0_49], %78 {strides = array<i32>} : memref<1x1x1x128xf32, #tpu.memory_space<vmem>>, vector<1x1x1x128xf32>,
    } else {
    }
    %c0 = arith.constant 0 : index
    %c0_4 = arith.constant 0 : index
    %c0_5 = arith.constant 0 : index
    %8 = vector.load %arg4[%c0, %c0_4, %c0_5] : memref<1x128x128xf32, #tpu.memory_space<vmem>>, vector<1x128x128xf32>
    %9 = vector.shape_cast %8 : vector<1x128x128xf32> to vector<128x128xf32>
    %c0_6 = arith.constant 0 : index
    %c0_7 = arith.constant 0 : index
    %c0_8 = arith.constant 0 : index
    %10 = vector.load %arg5[%c0_6, %c0_7, %c0_8] : memref<1x128x128xf32, #tpu.memory_space<vmem>>, vector<1x128x128xf32>
    %11 = vector.shape_cast %10 : vector<1x128x128xf32> to vector<128x128xf32>
    %c0_9 = arith.constant 0 : index
    %c0_10 = arith.constant 0 : index
    %c0_11 = arith.constant 0 : index
    %12 = vector.load %arg6[%c0_9, %c0_10, %c0_11] : memref<1x128x128xf32, #tpu.memory_space<vmem>>, vector<1x128x128xf32>
    %13 = vector.shape_cast %12 : vector<1x128x128xf32> to vector<128x128xf32>
    %cst = arith.constant dense<0.000000e+00> : vector<128x128xf32>
    %14 = tpu.matmul %9, %11, %cst {dimension_numbers = #tpu.dot_dimension_numbers<[1], [1], [0], [0], [0, 0, 1, 0], [], []>} : vector<128x128xf32>, vector<128x128xf32>, vector<128x128xf32> -> vector<128x128xf32>
    %15 = arith.mulf %9, %9 : vector<128x128xf32>
    %cst_12 = arith.constant dense<0.000000e+00> : vector<128xf32>
    %16 = vector.multi_reduction <add>, %15, %cst_12 [1] : vector<128x128xf32> to vector<128xf32>
    %17 = vector.shape_cast %16 : vector<128xf32> to vector<128x1xf32>
    %cst_13 = arith.constant 1.000000e+00 : f32
    %18 = vector.broadcast %cst_13 : f32 to vector<1x128xf32>
    %19 = arith.mulf %11, %11 : vector<128x128xf32>
    %cst_14 = arith.constant dense<0.000000e+00> : vector<1x128xf32>
    %20 = tpu.matmul %18, %19, %cst_14 {dimension_numbers = #tpu.dot_dimension_numbers<[1], [1], [0], [0], [0, 0, 1, 0], [], []>} : vector<1x128xf32>, vector<128x128xf32>, vector<1x128xf32> -> vector<1x128xf32>
    %21 = vector.broadcast %17 : vector<128x1xf32> to vector<128x128xf32>
    %22 = vector.broadcast %20 : vector<1x128xf32> to vector<128x128xf32>
    %23 = arith.mulf %21, %22 : vector<128x128xf32>
    %24 = arith.mulf %14, %14 : vector<128x128xf32>
    %25 = arith.subf %23, %24 : vector<128x128xf32>
    %cst_15 = arith.constant 0.000000e+00 : f32
    %26 = vector.broadcast %cst_15 : f32 to vector<128x128xf32>
    %27 = arith.maximumf %25, %26 : vector<128x128xf32>
    %cst_16 = arith.constant 9.99999993E-9 : f32
    %28 = vector.broadcast %cst_16 : f32 to vector<128x128xf32>
    %29 = arith.addf %27, %28 : vector<128x128xf32>
    %30 = math.sqrt %29 : vector<128x128xf32>
    %cst_17 = arith.constant 0.000000e+00 : f32
    %31 = vector.broadcast %cst_17 : f32 to vector<128x128xf32>
    %32 = arith.mulf %31, %14 : vector<128x128xf32>
    %cst_18 = arith.constant 1.000000e+00 : f32
    %33 = vector.broadcast %cst_18 : f32 to vector<128x128xf32>
    %34 = arith.mulf %33, %30 : vector<128x128xf32>
    %35 = arith.addf %32, %34 : vector<128x128xf32>
    %cst_19 = arith.constant 0.0883883461 : f32
    %36 = vector.broadcast %cst_19 : f32 to vector<128x128xf32>
    %37 = arith.mulf %35, %36 : vector<128x128xf32>
    %c0_20 = arith.constant 0 : index
    %c0_21 = arith.constant 0 : index
    %c0_22 = arith.constant 0 : index
    %c0_23 = arith.constant 0 : index
    %38 = vector.load %arg8[%c0_20, %c0_21, %c0_22, %c0_23] : memref<1x1x1x128xf32, #tpu.memory_space<vmem>>, vector<1x1x1x128xf32>
    %39 = vector.shape_cast %38 : vector<1x1x1x128xf32> to vector<1x128xf32>
    %40 = math.absf %37 : vector<128x128xf32>
    %41 = vector.shape_cast %40 : vector<128x128xf32> to vector<1x128x128xf32>
    %cst_24 = arith.constant dense<0.000000e+00> : vector<1xf32>
    %42 = vector.multi_reduction <add>, %41, %cst_24 [1, 2] : vector<1x128x128xf32> to vector<1xf32>
    %43 = vector.shape_cast %42 : vector<1xf32> to vector<1x1x1xf32>
    %44 = vector.extract %43[0, 0, 0] : f32 from vector<1x1x1xf32>
    %45 = vector.broadcast %44 : f32 to vector<1x128xf32>
    %46 = arith.addf %39, %45 : vector<1x128xf32>
    %c0_25 = arith.constant 0 : index
    %c0_26 = arith.constant 0 : index
    %c0_27 = arith.constant 0 : index
    %c0_28 = arith.constant 0 : index
    %47 = vector.load %arg8[%c0_25, %c0_26, %c0_27, %c0_28] : memref<1x1x1x128xf32, #tpu.memory_space<vmem>>, vector<1x1x1x128xf32>
    %48 = vector.shape_cast %47 : vector<1x1x1x128xf32> to vector<1x128xf32>
    %49 = vector.shape_cast %46 : vector<1x128xf32> to vector<1x1x1x128xf32>
    tpu.vector_store %arg8[%c0_25, %c0_26, %c0_27, %c0_28], %49 {strides = array<i32>} : memref<1x1x1x128xf32, #tpu.memory_space<vmem>>, vector<1x1x1x128xf32>,
    %c0_29 = arith.constant 0 : index
    %c0_30 = arith.constant 0 : index
    %50 = vector.load %arg9[%c0_29, %c0_30] : memref<128x1xf32, #tpu.memory_space<vmem>>, vector<128x1xf32>
    %cst_31 = arith.constant dense<0xFF800000> : vector<128xf32>
    %51 = vector.multi_reduction <maximumf>, %37, %cst_31 [1] : vector<128x128xf32> to vector<128xf32>
    %52 = vector.shape_cast %51 : vector<128xf32> to vector<128x1xf32>
    %53 = arith.maximumf %50, %52 : vector<128x1xf32>
    %54 = arith.subf %50, %53 : vector<128x1xf32>
    %55 = math.exp %54 : vector<128x1xf32>
    %56 = vector.broadcast %53 : vector<128x1xf32> to vector<128x128xf32>
    %57 = arith.subf %37, %56 : vector<128x128xf32>
    %58 = math.exp %57 : vector<128x128xf32>
    %c0_32 = arith.constant 0 : index
    %c0_33 = arith.constant 0 : index
    %59 = vector.load %arg10[%c0_32, %c0_33] : memref<128x1xf32, #tpu.memory_space<vmem>>, vector<128x1xf32>
    %60 = arith.mulf %55, %59 : vector<128x1xf32>
    %cst_34 = arith.constant dense<0.000000e+00> : vector<128xf32>
    %61 = vector.multi_reduction <add>, %58, %cst_34 [1] : vector<128x128xf32> to vector<128xf32>
    %62 = vector.shape_cast %61 : vector<128xf32> to vector<128x1xf32>
    %63 = arith.addf %60, %62 : vector<128x1xf32>
    %c0_35 = arith.constant 0 : index
    %c0_36 = arith.constant 0 : index
    %64 = vector.load %arg10[%c0_35, %c0_36] : memref<128x1xf32, #tpu.memory_space<vmem>>, vector<128x1xf32>
    tpu.vector_store %arg10[%c0_35, %c0_36], %63 {strides = array<i32>} : memref<128x1xf32, #tpu.memory_space<vmem>>, vector<128x1xf32>,
    %c0_37 = arith.constant 0 : index
    %c0_38 = arith.constant 0 : index
    %65 = vector.load %arg11[%c0_37, %c0_38] : memref<128x128xf32, #tpu.memory_space<vmem>>, vector<128x128xf32>
    %66 = vector.broadcast %55 : vector<128x1xf32> to vector<128x128xf32>
    %67 = arith.mulf %66, %65 : vector<128x128xf32>
    %cst_39 = arith.constant dense<0.000000e+00> : vector<128x128xf32>
    %68 = tpu.matmul %58, %13, %cst_39 {dimension_numbers = #tpu.dot_dimension_numbers<[1], [0], [0], [1], [0, 0, 1, 1], [], []>} : vector<128x128xf32>, vector<128x128xf32>, vector<128x128xf32> -> vector<128x128xf32>
    %69 = arith.addf %67, %68 : vector<128x128xf32>
    %c0_40 = arith.constant 0 : index
    %c0_41 = arith.constant 0 : index
    %70 = vector.load %arg11[%c0_40, %c0_41] : memref<128x128xf32, #tpu.memory_space<vmem>>, vector<128x128xf32>
    tpu.vector_store %arg11[%c0_40, %c0_41], %69 {strides = array<i32>} : memref<128x128xf32, #tpu.memory_space<vmem>>, vector<128x128xf32>,
    %c0_42 = arith.constant 0 : index
    %c0_43 = arith.constant 0 : index
    %71 = vector.load %arg9[%c0_42, %c0_43] : memref<128x1xf32, #tpu.memory_space<vmem>>, vector<128x1xf32>
    tpu.vector_store %arg9[%c0_42, %c0_43], %53 {strides = array<i32>} : memref<128x1xf32, #tpu.memory_space<vmem>>, vector<128x1xf32>,
    %c1_i32 = arith.constant 1 : i32
    %72 = arith.cmpi eq, %arg3, %c1_i32 : i32
    %73 = arith.extui %72 : i1 to i32
    %c0_i32_44 = arith.constant 0 : i32
    %74 = arith.cmpi ne, %73, %c0_i32_44 : i32
    scf.if %74 {
      %c0_45 = arith.constant 0 : index
      %c0_46 = arith.constant 0 : index
      %75 = vector.load %arg10[%c0_45, %c0_46] : memref<128x1xf32, #tpu.memory_space<vmem>>, vector<128x1xf32>
      %76 = tpu.reciprocal %75 {approx = true} : vector<128x1xf32> -> vector<128x1xf32>
      %c0_47 = arith.constant 0 : index
      %c0_48 = arith.constant 0 : index
      %77 = vector.load %arg11[%c0_47, %c0_48] : memref<128x128xf32, #tpu.memory_space<vmem>>, vector<128x128xf32>
      %78 = vector.broadcast %76 : vector<128x1xf32> to vector<128x128xf32>
      %79 = arith.mulf %77, %78 : vector<128x128xf32>
      %c0_49 = arith.constant 0 : index
      %c0_50 = arith.constant 0 : index
      %c0_51 = arith.constant 0 : index
      %80 = vector.load %arg7[%c0_49, %c0_50, %c0_51] : memref<1x128x128xf32, #tpu.memory_space<vmem>>, vector<1x128x128xf32>
      %81 = vector.shape_cast %80 : vector<1x128x128xf32> to vector<128x128xf32>
      %82 = vector.shape_cast %79 : vector<128x128xf32> to vector<1x128x128xf32>
      tpu.vector_store %arg7[%c0_49, %c0_50, %c0_51], %82 {strides = array<i32>} : memref<1x128x128xf32, #tpu.memory_space<vmem>>, vector<1x128x128xf32>,
    } else {
    }
    return
  }
  func.func @transform_0(%arg0: i32, %arg1: i32, %arg2: i32, %arg3: i32) -> (i32, i32, i32) {
    %c0_i32 = arith.constant 0 : i32
    return %arg0, %arg2, %arg1 : i32, i32, i32
  }
  func.func @transform_1(%arg0: i32, %arg1: i32, %arg2: i32, %arg3: i32) -> (i32, i32, i32) {
    %c0_i32 = arith.constant 0 : i32
    return %arg0, %arg3, %arg1 : i32, i32, i32
  }
  func.func @transform_2(%arg0: i32, %arg1: i32, %arg2: i32, %arg3: i32) -> (i32, i32, i32) {
    %c0_i32 = arith.constant 0 : i32
    return %arg0, %arg3, %arg1 : i32, i32, i32
  }
  func.func @transform_3(%arg0: i32, %arg1: i32, %arg2: i32, %arg3: i32) -> (i32, i32, i32) {
    %c0_i32 = arith.constant 0 : i32
    return %arg0, %arg2, %arg1 : i32, i32, i32
  }
  func.func @transform_4(%arg0: i32, %arg1: i32, %arg2: i32, %arg3: i32) -> (i32, i32, i32, i32) {
    %c0_i32 = arith.constant 0 : i32
    %c0_i32_0 = arith.constant 0 : i32
    %c0_i32_1 = arith.constant 0 : i32
    return %arg0, %arg1, %c0_i32, %c0_i32_0 : i32, i32, i32, i32
  }
}

</mosaic_0001>

<bundles_post_ra>
// kernel: tpu_custom_call.1
= control target key start
LH: loop header
LB: loop body
LE: loop exit
PB: predicated region body
PF: predicated region fallthrough
CT: control target
= control target key end

     0   :  { %s4276_s0 = inlined_call_operand.hbm [shape: f32[2,256,512], index: 0, kind: input, shape index: {}]   ;;  %s4277_s1 = inlined_call_operand.hbm [shape: f32[2,256,512], index: 1, kind: input, shape index: {}]   ;;  %s4278_s2 = inlined_call_operand.hbm [shape: f32[2,256,512], index: 2, kind: input, shape index: {}]   ;;  %s4279_s3 = inlined_call_operand.hbm [shape: f32[2,256,512], index: 3, kind: output, shape index: {0}]   ;;  %s4280_s4 = inlined_call_operand.hbm [shape: f32[2,4,1,128], index: 4, kind: output, shape index: {1}]  }
   0x1   :  { %4325 = sst [smem:[#allocation44_spill]] %s4276_s0 }
   0x2   :  { %4326 = sst [smem:[#allocation45_spill]] %s4277_s1 }
   0x3   :  { %4327 = sst [smem:[#allocation46_spill]] %s4278_s2 }
   0x4   :  { %4328 = sst [smem:[#allocation47_spill]] %s4279_s3 }
   0x5   :  { %4329 = sst [smem:[#allocation48_spill]] %s4280_s4 }
   0x6   :  { %10 = vsyncpa [#allocation6], 0 }
   0x7   :  { %12 = vsyncpa [#allocation6 + $0x1], 0 }
   0x8   :  { %13 = vsyncpa [#allocation9], 0 }
   0x9   :  { %15 = vsyncpa [#allocation9 + $0x1], 0 }
   0xa   :  { %16 = vsyncpa [#allocation7], 0 }
   0xb   :  { %18 = vsyncpa [#allocation7 + $0x1], 0 }
   0xc   :  { %19 = vsyncpa [#allocation13], 0 }
   0xd   :  { %21 = vsyncpa [#allocation13 + $0x1], 0  ;;  %s3025_s15 = smov 0   ;;  %s3027_s16 = smov 0  }
   0xe   :  { %s3029_s17 = smov 0   ;;  %s3031_s18 = smov 0  }
   0xf   :  { %4330 = sst [smem:[#allocation18_spill]] %s3031_s18  ;;  %s3033_s19 = smov 0  }
  0x10   :  { %s3035_s20 = smov 0   ;;  %s3037_s21 = smov 0  }
  0x11   :  { %s3039_s22 = smov 0   ;;  %s3041_s23 = smov 0  }
  0x12   :  { %s3043_s24 = smov 0   ;;  %s3045_s25 = smov 0  }
  0x13   :  { %s3047_s26 = smov 0   ;;  %s3049_s27 = smov 0  }
  0x14   :  { %s3051_s28 = smov 0   ;;  %s3053_s29 = smov 0  }
  0x15   :  { %s3055_s30 = smov 0   ;;  %s3057_s5 = smov 0  }
  0x16   :  { %s3059_s6 = smov 0  }
  0x17 LB: > { %s4332_s18 = sld [smem:[#allocation18_spill]]  ;;  %s42_s7 = sadd.s32 1, %s2963_s28  ;;  %s2979_s6 = sphi %s3059_s6, %s27_s6   ;;  %s2975_s5 = sphi %s3057_s5, %s4432_s5   ;;  %s2971_s30 = sphi %s3055_s30, %s4440_s30   ;;  %s2967_s29 = sphi %s3053_s29, %s4430_s29   ;;  %s2963_s28 = sphi %s3051_s28, %s4429_s28   ;;  %s2959_s27 = sphi %s3049_s27, %s4428_s27   ;;  %s2955_s26 = sphi %s3047_s26, %s4427_s26   ;;  %s2951_s25 = sphi %s3045_s25, %s4426_s25   ;;  %s2947_s24 = sphi %s3043_s24, %s4425_s24   ;;  %s2943_s23 = sphi %s3041_s23, %s4439_s23   ;;  %s2939_s22 = sphi %s3039_s22, %s4438_s22   ;;  %s2935_s21 = sphi %s3037_s21, %s4423_s21   ;;  %s2931_s20 = sphi %s3035_s20, %s4437_s20   ;;  %s2927_s19 = sphi %s3033_s19, %s4422_s19   ;;  %s2919_s17 = sphi %s3029_s17, %s4434_s17   ;;  %s2915_s16 = sphi %s3027_s16, %s4433_s16   ;;  %s2911_s15 = sphi %s3025_s15, %s4420_s15  }
  0x18   : > { %4333 = sst [smem:[#allocation18_spill]] %s2911_s15  ;;  %s3115_s8 = sadd.s32 4294967295, %s2979_s6  }
  0x19   : > { %4334 = sst [smem:[#allocation19_spill]] %s2915_s16  ;;  %p3117_p0 = scmp.ge.s32.totalorder %s42_s7, 2 }
  0x1a   : > { %4335 = sst [smem:[#allocation20_spill]] %s2927_s19  ;;  %p72_p1 = scmp.eq.s32.totalorder %s2979_s6, 0 }
  0x1b   : > { %4336 = sst [smem:[#allocation21_spill]] %s2931_s20  ;;  %s4442_s7 = smov (%p3117_p0, %s42_s7), 0 }
  0x1c   : > { %4337 = sst [smem:[#allocation22_spill]] %s2935_s21  ;;  %p78_p2 = scmp.eq.s32.totalorder %s3115_s8, 0 }
  0x1d   : > { %4338 = sst [smem:[#allocation23_spill]] %s2939_s22  ;;  %p101_p3 = scmp.ne.s32.totalorder %s2931_s20, %s2927_s19 }
  0x1e   : > { %4339 = sst [smem:[#allocation24_spill]] %s2947_s24  ;;  %p107_p4 = scmp.ne.s32.totalorder %s2927_s19, %s4332_s18 }
  0x1f   : > { %4340 = sst [smem:[#allocation25_spill]] %s2951_s25  ;;  %p3135_p5 = por %p101_p3, %p72_p1 }
  0x20   : > { %4341 = sst [smem:[#allocation26_spill]] %s2955_s26  ;;  %p4299_p6 = scmp.lt.s32.totalorder %s2979_s6, 32 }
  0x21   : > { %4342 = sst [smem:[#allocation27_spill]] %s2959_s27  ;;  %p3142_p7 = por %p107_p4, %p78_p2 }
  0x22   : > { %4343 = sst [smem:[#allocation28_spill]] %s2963_s28  ;;  %s4298_s11 = sshll.u32 %s2975_s5, 7 }
  0x23   : > { %4344 = sst [smem:[#allocation29_spill]] %s2967_s29  ;;  %s244_s10 = sand.u32 1, %s2979_s6  }
  0x24   : > { %4345 = sst [smem:[#allocation30_spill]] %s2971_s30  ;;  %s246_s12 = sand.u32 1, %s2931_s20  }
  0x25   : > { %4346 = sst [smem:[#allocation31_spill]] %s2975_s5  ;;  %s3149_s4 = sshll.u32 %s246_s12, 7 }
  0x26   : > { %4347 = sst [smem:[#allocation32_spill]] %s3115_s8  ;;  %s2101_s18 = sshll.u32 %s2963_s28, 6 }
  0x27   : > { %4349 = sst [smem:[#allocation33_spill]] %s4442_s7  ;;  %s254_s3 = sadd.s32 %s2971_s30, %s2101_s18 }
  0x28   : > { %s4351_s14 = scalar_select %p3142_p7, 1, 0 }
  0x29   : > { %s256_s27 = sadd.s32 %s4298_s11, %s254_s3  ;;  %s248_s26 = scalar_lea.vmem [#allocation8], %s3149_s4 }
  0x2a   : > { %4352 = sst [smem:[#allocation34_spill]] %s4351_s14  ;;  %s259_s25 = sshll.u32 %s248_s26, 4  ;;  %s260_s25 = int_to_ptr.vmem [resolvable:$true] %s259_s25 }
  0x2b   : > { %s2078_s24 = sshll.u32 %s256_s27, 7  ;;  %s4353_s1 = sld [smem:[#allocation45_spill]] }
  0x2c   : > { %p3163_p8 = pnand %p4299_p6, %p3135_p5  ;;  %s4355_s2 = sld [smem:[#allocation46_spill]] }
  0x2d   : > { %s3174_s26 = scalar_lea.sflag [#allocation9], %s244_s10  ;;  %s2698_s0 = scalar_lea.vmem %s260_s25, 2048 }
  0x2e   : > { %p4295_p9 = pneg %p3163_p8  ;;  %p2699_p10 = scmp.ne.s32.totalorder %s260_s25, %s2698_s0 }
  0x2f   : > { %s2981_s19 = smov [#allocation8]  }
  0x30   : > { %p2701_p11 = pnand %p2699_p10, %p4295_p9  ;;  %s2703_s27 = sshll.u32 %s2981_s19, 4  ;;  %s2704_s27 = int_to_ptr.vmem [resolvable:$false] %s2703_s27 }
  0x31   : > { %s258_s15 = scalar_lea.hbm %s4353_s1, %s2078_s24  ;;  %s2705_s13 = scalar_lea.vmem %s2704_s27, 4096 }
  0x32   : > { %s3172_s3 = scalar_lea.hbm %s4355_s2, %s2078_s24  ;;  %p2702_p12 = pneg %p2701_p11 }
  0x33   : > { %p2706_p13 = scmp.lt.s32.totalorder %s260_s25, %s2704_s27  ;;  %p2707_p3 = scmp.lt.s32.totalorder %s2705_s13, %s2698_s0 }
  0x35   : > { %p2708_p4 = por %p2707_p3, %p2706_p13 }
  0x37   : > { %p2709_p5 = pnand %p2708_p4, %p2702_p12 }
  0x39   : > { %2712 = shalt.err (!%p2709_p5)
}
  0x3a   : > { %s4291_s20 = smov 512   ;;  %s4293_s24 = smov 128  }
  0x3b   : > { %s4296_s10 = smov 8   ;;  %s273_s18 = scalar_lea.vmem [#allocation10], %s3149_s4 }
  0x3c   : > { %2382 = dma.hbm_to_vmem [thread:$0]  (!%p3163_p8), %s258_s15, 2048, %s260_s25, %s3174_s26, %s4291_s20, %s4293_s24, %s4296_s10  }
  0x3d   : > { %s3188_s0 = sshll.u32 %s273_s18, 4  ;;  %p2084_p10 = scmp.ge.s32.totalorder %s2979_s6, 1  ;;  %s3298_s0 = int_to_ptr.vmem [resolvable:$true] %s3188_s0 }
  0x3e   : > { %p292_p11 = scmp.lt.s32.totalorder %s2979_s6, 33  ;;  %s2066_s27 = sadd.s32 4294967294, %s2979_s6  }
  0x3f   : > { %s45_s13 = sadd.s32 1, %s2967_s29  ;;  %p71_p13 = scmp.ne.s32.totalorder %s2943_s23, %s2939_s22 }
  0x40   : > { %p3192_p12 = pnand %p2084_p10, %p292_p11  ;;  %s4444_s13 = smov (!%p3117_p0, %s45_s13), %s2967_s29 }
  0x41   : > { %p47_p3 = scmp.ge.s32.totalorder %s4444_s13, 2  ;;  %p77_p4 = scmp.ne.s32.totalorder %s2939_s22, %s2935_s21 }
  0x42   : > { %p3208_p5 = por %p72_p1, %p71_p13  ;;  %s4358_s25 = sld [smem:[#allocation18_spill]] }
  0x43   : > { %p165_p10 = scmp.eq.s32.totalorder %s3115_s8, 31  ;;  %s4446_s13 = smov (%p47_p3, %s4444_s13), 0 }
  0x44   : > { %4359 = sst [smem:[#allocation35_spill]] %s4446_s13  ;;  %s4360_s9 = sadd.s32 1, %s2971_s30 }
  0x45   : > { %s4448_s9 = smov (!%p47_p3, %s4360_s9), %s2971_s30  ;;  %s58_s18 = ssub.s32 %s2967_s29, %s4446_s13 }
  0x46   : > { %p3225_p0 = por %p78_p2, %p77_p4  ;;  %p51_p1 = scmp.ge.s32.totalorder %s4448_s9, 4 }
  0x47   : > { %p3231_p11 = por %p165_p10, %p71_p13  ;;  %p171_p9 = scmp.eq.s32.totalorder %s2066_s27, 31 }
  0x48   : > { %s4361_s20 = scalar_select %p3225_p0, 1, 0 }
  0x49   : > { %s4363_s24 = scalar_select %p3231_p11, 1, 0 }
  0x4a   : > { %4362 = sst [smem:[#allocation36_spill]] %s4361_s20  ;;  %s182_s10 = sadd.s32 1, %s2919_s17 }
  0x4b   : > { %4364 = sst [smem:[#allocation37_spill]] %s4363_s24  ;;  %s4450_s9 = smov (%p51_p1, %s4448_s9), 0 }
  0x4c   : > { %4365 = sst [smem:[#allocation38_spill]] %s4450_s9  ;;  %s4366_s11 = sadd.s32 1, %s2975_s5 }
  0x4d   : > { %s4452_s11 = smov (!%p51_p1, %s4366_s11), %s2975_s5  ;;  %s60_s4 = ssub.s32 %s2971_s30, %s4450_s9 }
  0x4e   : > { %p3246_p2 = por %p171_p9, %p77_p4  ;;  %p55_p3 = scmp.ge.s32.totalorder %s4452_s11, 2 }
  0x4f   : > { %p192_p13 = scmp.ne.s32.totalorder %s2919_s17, %s2915_s16  ;;  %s4369_s1 = sld [smem:[#allocation21_spill]] }
  0x50   : > { %s4367_s12 = scalar_select %p3246_p2, 1, 0 }
  0x51   : > { %p198_p6 = scmp.ne.s32.totalorder %s2915_s16, %s4358_s25  ;;  %s219_s27 = sand.u32 1, %s2943_s23  }
  0x52   : > { %4368 = sst [smem:[#allocation39_spill]] %s4367_s12  ;;  %s4454_s11 = smov (%p55_p3, %s4452_s11), 0 }
  0x53   : > { %4370 = sst [smem:[#allocation40_spill]] %s4454_s11  ;;  %p3259_p1 = por %p192_p13, %p165_p10 }
  0x54   : > { %p3263_p4 = por %p198_p6, %p171_p9  ;;  %s57_s13 = ssub.s32 %s2975_s5, %s4454_s11 }
  0x55   : > { %s4371_s2 = scalar_select %p3259_p1, 1, 0 }
  0x56   : > { %s4373_s9 = scalar_select %p3263_p4, 1, 0 }
  0x57   : > { %4372 = sst [smem:[#allocation41_spill]] %s4371_s2  ;;  %s59_s12 = sor.u32 %s58_s18, %s57_s13 }
  0x58   : > { %4374 = sst [smem:[#allocation42_spill]] %s4373_s9  ;;  %s4375_s21 = ssub.s32 %s2963_s28, %s4442_s7 }
  0x59   : > { %s89_s25 = sor.u32 %s4375_s21, %s57_s13  ;;  %s61_s24 = sor.u32 %s60_s4, %s59_s12 }
  0x5a   : > { %s91_s16 = sor.u32 %s89_s25, %s60_s4  ;;  %p62_p10 = scmp.eq.s32.totalorder %s61_s24, 0 }
  0x5b   : > { %p92_p3 = scmp.eq.s32.totalorder %s91_s16, 0  ;;  %s179_s8 = sor.u32 %s60_s4, %s57_s13 }
  0x5c   : > { %s2069_s2 = sshll.u32 %s219_s27, 7  ;;  %s4376_s20 = sadd.s32 1, %s2943_s23 }
  0x5d   : > { %s3275_s22 = scalar_select %p62_p10, %s2943_s23, %s4376_s20  }
  0x5e   : > { %s4378_s9 = sadd.s32 1, %s4369_s1  ;;  %p180_p6 = scmp.eq.s32.totalorder %s179_s8, 0 }
  0x5f   : > { %4377 = sst [smem:[#allocation43_spill]] %s3275_s22  ;;  %s4456_s1 = smov (!%p92_p3, %s4369_s1), %s4378_s9 }
  0x60   : > { %s2100_s18 = sshll.u32 %s2967_s29, 6  ;;  %s223_s11 = scalar_lea.vmem [#allocation5], %s2069_s2 }
  0x61   : > { %s234_s21 = sshll.u32 %s223_s11, 4  ;;  %s229_s12 = sadd.s32 %s2971_s30, %s2100_s18  ;;  %s235_s21 = int_to_ptr.vmem [resolvable:$true] %s234_s21 }
  0x62   : > { %s3284_s7 = scalar_select %p180_p6, %s2919_s17, %s182_s10  }
  0x63   : > { %s4379_s25 = sshll.u32 %s2975_s5, 7  ;;  %p4380_p9 = scmp.lt.s32.totalorder %s2979_s6, 32 }
  0x64   : > { %s231_s28 = sadd.s32 %s4379_s25, %s229_s12  ;;  %s4382_s2 = sld [smem:[#allocation44_spill]] }
  0x65   : > { %p3293_p13 = pnand %p4380_p9, %p3208_p5  ;;  %s2073_s20 = sshll.u32 %s231_s28, 7 }
  0x66   : > { %s220_s10 = scalar_lea.sflag [#allocation6], %s219_s27  ;;  %s2726_s13 = scalar_lea.vmem %s235_s21, 2048 }
  0x67   : > { %p2715_p10 = pneg %p3293_p13  ;;  %p2727_p3 = scmp.ne.s32.totalorder %s235_s21, %s2726_s13 }
  0x68   : > { %s2985_s4 = smov [#allocation5]  }
  0x69   : > { %p2729_p6 = pnand %p2727_p3, %p2715_p10  ;;  %s2731_s15 = sshll.u32 %s2985_s4, 4  ;;  %s2732_s15 = int_to_ptr.vmem [resolvable:$false] %s2731_s15 }
  0x6a   : > { %s233_s11 = scalar_lea.hbm %s4382_s2, %s2073_s20  ;;  %s2733_s9 = scalar_lea.vmem %s2732_s15, 4096 }
  0x6b   : > { %p2730_p4 = pneg %p2729_p6  ;;  %p2734_p5 = scmp.lt.s32.totalorder %s235_s21, %s2732_s15 }
  0x6c   : > { %p2735_p9 = scmp.lt.s32.totalorder %s2733_s9, %s2726_s13 }
  0x6e   : > { %p2736_p2 = por %p2735_p9, %p2734_p5 }
  0x70   : > { %p2737_p1 = pnand %p2736_p2, %p2730_p4 }
  0x72   : > { %2740 = shalt.err (!%p2737_p1)
}
  0x73   : > { %s4383_s28 = smov 8   ;;  %s4384_s18 = smov 128  }
  0x74   : > { %s4385_s27 = smov 512   ;;  %s2754_s12 = scalar_lea.vmem %s3298_s0, 2048 }
  0x75   : > { %2379 = dma.hbm_to_vmem [thread:$0]  (!%p3293_p13), %s233_s11, 2048, %s235_s21, %s220_s10, %s4385_s27, %s4384_s18, %s4383_s28  }
  0x76   : > { %p2755_p10 = scmp.ne.s32.totalorder %s3298_s0, %s2754_s12  ;;  %p4386_p3 = pneg %p3163_p8 }
  0x77   : > { %s2986_s25 = smov [#allocation10]  }
  0x78   : > { %p2757_p6 = pnand %p2755_p10, %p4386_p3  ;;  %s2759_s20 = sshll.u32 %s2986_s25, 4  ;;  %s2760_s20 = int_to_ptr.vmem [resolvable:$false] %s2759_s20 }
  0x79   : > { %s2761_s8 = scalar_lea.vmem %s2760_s20, 4096  ;;  %p2762_p2 = scmp.lt.s32.totalorder %s3298_s0, %s2760_s20 }
  0x7a   : > { %p2758_p11 = pneg %p2757_p6  ;;  %p2763_p1 = scmp.lt.s32.totalorder %s2761_s8, %s2754_s12 }
  0x7c   : > { %p2764_p4 = por %p2763_p1, %p2762_p2 }
  0x7e   : > { %p2765_p5 = pnand %p2764_p4, %p2758_p11 }
  0x80   : > { %2768 = shalt.err (!%p2765_p5)
}
  0x81   : > { %2385 = dma.hbm_to_vmem [thread:$0]  (!%p3163_p8), %s3172_s3, 2048, %s3298_s0, %s3174_s26, %s4385_s27, %s4384_s18, %s4383_s28  }
  0x82   : > { %296 = sbr.rel (%p3192_p12) target bundleno = 1283 (0x503), region = 32  ;;  %s4387_s21 = sld [smem:[#allocation23_spill]] (!%p3192_p12) }
  0x88   : > { %s3327_s24 = sand.u32 1, %s4387_s21  }
  0x89   : > { %s2085_s2 = sshll.u32 %s3327_s24, 7  ;;  %s299_s11 = scalar_lea.sflag [#allocation6], %s3327_s24 }
  0x8a   : > { %s3331_s10 = scalar_lea.vmem [#allocation5], %s2085_s2 }
  0x8b   : > { %2894 = dma.done.wait (%p3225_p0), %s299_s11, 2048  }
  0x8c   : > { %2896 = vsyncadd (%p3225_p0), %s299_s11, 4294965248  ;;  %s4389_s14 = sld [smem:[#allocation32_spill]] }
  0x8d   : > { %s4390_s3 = sld [smem:[#allocation20_spill]] }
  0x92   : > { %s307_s0 = sand.u32 1, %s4389_s14  }
  0x93   : > { %s309_s19 = sand.u32 1, %s4390_s3   ;;  %s308_s4 = scalar_lea.sflag [#allocation9], %s307_s0 }
  0x94   : > { %s2086_s13 = sshll.u32 %s309_s19, 7 }
  0x95   : > { %s3339_s15 = scalar_lea.vmem [#allocation8], %s2086_s13 }
  0x96   : > { %2898 = dma.done.wait (%p3142_p7), %s308_s4, 4096  }
  0x97   : > { %2900 = vsyncadd (%p3142_p7), %s308_s4, 4294963200  ;;  %s4392_s9 = sld [smem:[#allocation19_spill]]  ;;  %s3347_s27 = scalar_lea.vmem [#allocation10], %s2086_s13 }
  0x98   : > { %s4393_s28 = sld [smem:[#allocation24_spill]]  ;;  %s3349_s12 = scalar_lea.vmem [#allocation11], %s2085_s2 }
  0x9d   : > { %s4320_s18 = sand.u32 1, %s4392_s9  }
  0x9e   : > { %p363_p8 = scmp.eq.s32.totalorder %s4393_s28, 0  ;;  %s3353_s25 = scalar_lea.vmem [#allocation12], %s4320_s18 }
  0x9f   : > { %p2089_p12 = scmp.ne.s32.totalorder %s4393_s28, 0 }
  0xa1   : > { %366 = sbr.rel (%p2089_p12) target bundleno = 191 (0xbf), region = 48 }
  0xa6   : > { %vm367_vm0 = vcmask 7168   ;;  %v2987_v0 = vmov -inf   ;;  %v2988_v1 = vmov 0.0  }
  0xa7   : > { %368 = vst.msk [vmem:[#allocation2] sm:$0xff] %vm367_vm0, %v2987_v0  ;;  %369 = vst.msk [vmem:[#allocation2 + $0x8] sm:$0xff] %vm367_vm0, %v2987_v0 }
  0xa8   : > { %370 = vst.msk [vmem:[#allocation2 + $0x10] sm:$0xff] %vm367_vm0, %v2987_v0  ;;  %371 = vst.msk [vmem:[#allocation2 + $0x18] sm:$0xff] %vm367_vm0, %v2987_v0 }
  0xa9   : > { %372 = vst.msk [vmem:[#allocation2 + $0x20] sm:$0xff] %vm367_vm0, %v2987_v0  ;;  %373 = vst.msk [vmem:[#allocation2 + $0x28] sm:$0xff] %vm367_vm0, %v2987_v0 }
  0xaa   : > { %374 = vst.msk [vmem:[#allocation2 + $0x30] sm:$0xff] %vm367_vm0, %v2987_v0  ;;  %375 = vst.msk [vmem:[#allocation2 + $0x38] sm:$0xff] %vm367_vm0, %v2987_v0 }
  0xab   : > { %376 = vst.msk [vmem:[#allocation2 + $0x40] sm:$0xff] %vm367_vm0, %v2987_v0  ;;  %377 = vst.msk [vmem:[#allocation2 + $0x48] sm:$0xff] %vm367_vm0, %v2987_v0 }
  0xac   : > { %378 = vst.msk [vmem:[#allocation2 + $0x50] sm:$0xff] %vm367_vm0, %v2987_v0  ;;  %379 = vst.msk [vmem:[#allocation2 + $0x58] sm:$0xff] %vm367_vm0, %v2987_v0 }
  0xad   : > { %380 = vst.msk [vmem:[#allocation2 + $0x60] sm:$0xff] %vm367_vm0, %v2987_v0  ;;  %381 = vst.msk [vmem:[#allocation2 + $0x68] sm:$0xff] %vm367_vm0, %v2987_v0 }
  0xae   : > { %382 = vst.msk [vmem:[#allocation2 + $0x70] sm:$0xff] %vm367_vm0, %v2987_v0  ;;  %383 = vst.msk [vmem:[#allocation2 + $0x78] sm:$0xff] %vm367_vm0, %v2987_v0 }
  0xaf   : > { %384 = vst.msk [vmem:[#allocation3] sm:$0xff] %vm367_vm0, %v2988_v1  ;;  %385 = vst.msk [vmem:[#allocation3 + $0x8] sm:$0xff] %vm367_vm0, %v2988_v1 }
  0xb0   : > { %386 = vst.msk [vmem:[#allocation3 + $0x10] sm:$0xff] %vm367_vm0, %v2988_v1  ;;  %387 = vst.msk [vmem:[#allocation3 + $0x18] sm:$0xff] %vm367_vm0, %v2988_v1 }
  0xb1   : > { %388 = vst.msk [vmem:[#allocation3 + $0x20] sm:$0xff] %vm367_vm0, %v2988_v1  ;;  %389 = vst.msk [vmem:[#allocation3 + $0x28] sm:$0xff] %vm367_vm0, %v2988_v1 }
  0xb2   : > { %390 = vst.msk [vmem:[#allocation3 + $0x30] sm:$0xff] %vm367_vm0, %v2988_v1  ;;  %391 = vst.msk [vmem:[#allocation3 + $0x38] sm:$0xff] %vm367_vm0, %v2988_v1 }
  0xb3   : > { %392 = vst.msk [vmem:[#allocation3 + $0x40] sm:$0xff] %vm367_vm0, %v2988_v1  ;;  %393 = vst.msk [vmem:[#allocation3 + $0x48] sm:$0xff] %vm367_vm0, %v2988_v1 }
  0xb4   : > { %394 = vst.msk [vmem:[#allocation3 + $0x50] sm:$0xff] %vm367_vm0, %v2988_v1  ;;  %395 = vst.msk [vmem:[#allocation3 + $0x58] sm:$0xff] %vm367_vm0, %v2988_v1 }
  0xb5   : > { %396 = vst.msk [vmem:[#allocation3 + $0x60] sm:$0xff] %vm367_vm0, %v2988_v1  ;;  %397 = vst.msk [vmem:[#allocation3 + $0x68] sm:$0xff] %vm367_vm0, %v2988_v1 }
  0xb6   : > { %398 = vst.msk [vmem:[#allocation3 + $0x70] sm:$0xff] %vm367_vm0, %v2988_v1  ;;  %399 = vst.msk [vmem:[#allocation3 + $0x78] sm:$0xff] %vm367_vm0, %v2988_v1 }
  0xb7   : > { %400 = vst [vmem:[#allocation4 + $0x30] sm:$0xff] %v2988_v1  ;;  %401 = vst [vmem:[#allocation4] sm:$0xff] %v2988_v1 }
  0xb8   : > { %402 = vst [vmem:[#allocation4 + $0x58] sm:$0xff] %v2988_v1  ;;  %403 = vst [vmem:[#allocation4 + $0x18] sm:$0xff] %v2988_v1 }
  0xb9   : > { %404 = vst [vmem:[#allocation4 + $0x50] sm:$0xff] %v2988_v1  ;;  %405 = vst [vmem:[#allocation4 + $0x68] sm:$0xff] %v2988_v1 }
  0xba   : > { %406 = vst [vmem:[#allocation4 + $0x8] sm:$0xff] %v2988_v1  ;;  %407 = vst [vmem:[#allocation4 + $0x48] sm:$0xff] %v2988_v1 }
  0xbb   : > { %408 = vst [vmem:[#allocation4 + $0x40] sm:$0xff] %v2988_v1  ;;  %409 = vst [vmem:[#allocation4 + $0x20] sm:$0xff] %v2988_v1 }
  0xbc   : > { %410 = vst [vmem:[#allocation4 + $0x10] sm:$0xff] %v2988_v1  ;;  %411 = vst [vmem:[#allocation4 + $0x38] sm:$0xff] %v2988_v1 }
  0xbd   : > { %412 = vst [vmem:[#allocation4 + $0x60] sm:$0xff] %v2988_v1  ;;  %413 = vst [vmem:[#allocation4 + $0x70] sm:$0xff] %v2988_v1 }
  0xbe   : > { %414 = vst [vmem:[#allocation4 + $0x78] sm:$0xff] %v2988_v1  ;;  %415 = vst [vmem:[#allocation4 + $0x28] sm:$0xff] %v2988_v1 }
  0xbf PF: > { %s4394_s20 = sld [smem:[#allocation25_spill]] }
  0xc5   : > { %p416_p7 = scmp.eq.s32.totalorder %s4394_s20, 0 }
  0xc7   : > { %p417_p0 = pnand %p416_p7, %p363_p8 }
  0xc9   : > { %420 = sbr.rel (%p417_p0) target bundleno = 208 (0xd0), region = 52 }
  0xce   : > { %v2989_v2 = vmov 0.0  }
  0xcf   : > { %421 = vst [vmem:[%s3353_s25] sm:$0x1] %v2989_v2 }
  0xd0 PF: > { %v453_v3 = vld [vmem:[%s3339_s15 + $0x78] sm:$0xff]  ;;  %v452_v4 = vld [vmem:[%s3339_s15 + $0x70] sm:$0xff]  ;;  %v2990_v5 = vmov 0.0   ;;  %vm2991_vm1 = vmmov 0   ;;  %v451_v8 = vld [vmem:[%s3339_s15 + $0x68] sm:$0xff]  ;;  %s4399_s16 = sld [smem:[#allocation24_spill]] }
  0xd1   : > { %2185 = vmatprep.subr.mxu0 %v453_v3  ;;  %2241 = vmatprep.subr.mxu1 %v2990_v5  ;;  %v678_v6 = vmul.f32 %v453_v3, %v453_v3  ;;  %v677_v7 = vmul.f32 %v452_v4, %v452_v4  ;;  %v422_v9 = vld [vmem:[%s3331_s10] sm:$0xff]  ;;  %v3400_v10 = vld [vmem:[%s3331_s10 + $0x8] sm:$0xff]  ;;  %v676_v13 = vmul.f32 %v451_v8, %v451_v8  ;;  %v3417_v20 = vld [vmem:[%s3331_s10 + $0x50] sm:$0xff] }
  0xd2   : > { %2186 = vmatpush3.xpose.msra.mxu0 %v453_v3  ;;  %2273 = vmatprep.mubr.msk.f32.mxu1 %vm2991_vm1, %v2990_v5  ;;  %v616_v11 = vmul.f32 %v3400_v10, %v3400_v10  ;;  %v615_v12 = vmul.f32 %v422_v9, %v422_v9  ;;  %v450_v14 = vld [vmem:[%s3339_s15 + $0x60] sm:$0xff]  ;;  %v3410_v16 = vld [vmem:[%s3331_s10 + $0x48] sm:$0xff]  ;;  %v449_v21 = vld [vmem:[%s3339_s15 + $0x58] sm:$0xff]  ;;  %v625_v23 = vmul.f32 %v3417_v20, %v3417_v20 }
  0xd3   : > { %2242 = vmatpush3.xpose.msra.mxu1 %v678_v6  ;;  %2187 = vmatprep.subr.mxu0 %v452_v4  ;;  %v3407_v15 = vld [vmem:[%s3331_s10 + $0x40] sm:$0xff]  ;;  %v624_v17 = vmul.f32 %v3410_v16, %v3410_v16  ;;  %v675_v19 = vmul.f32 %v450_v14, %v450_v14  ;;  %v3422_v22 = vld [vmem:[%s3331_s10 + $0x10] sm:$0xff]  ;;  %v674_v25 = vmul.f32 %v449_v21, %v449_v21  ;;  %v3429_v26 = vld [vmem:[%s3331_s10 + $0x58] sm:$0xff]  ;;  %v749_v6 = vlaneseq }
  0xd4   : > { %2243 = vmatprep.subr.mxu1 %v2990_v5  ;;  %2217 = vmatprep.mubr.f32.mxu0 %v422_v9  ;;  %v623_v18 = vmul.f32 %v3407_v15, %v3407_v15  ;;  %v617_v24 = vmul.f32 %v3422_v22, %v3422_v22  ;;  %v448_v27 = vld [vmem:[%s3339_s15 + $0x50] sm:$0xff]  ;;  %v3434_v28 = vld [vmem:[%s3331_s10 + $0x18] sm:$0xff]  ;;  %v626_v29 = vmul.f32 %v3429_v26, %v3429_v26  ;;  %v3441_v32 = vld [vmem:[%s3331_s10 + $0x60] sm:$0xff] }
  0xd5   : > { %633 = vadd.xlane.f32.xlu1 %v616_v11  ;;  %631 = vadd.xlane.f32.xlu0 %v615_v12  ;;  %v618_v30 = vmul.f32 %v3434_v28, %v3434_v28  ;;  %v673_v31 = vmul.f32 %v448_v27, %v448_v27  ;;  %v447_v33 = vld [vmem:[%s3339_s15 + $0x48] sm:$0xff]  ;;  %v3446_v34 = vld [vmem:[%s3331_s10 + $0x20] sm:$0xff]  ;;  %v627_v35 = vmul.f32 %v3441_v32, %v3441_v32  ;;  %v3465_v44 = vld [vmem:[%s3331_s10 + $0x70] sm:$0xff] }
  0xd6   : > { %2188 = vmatpush3.xpose.msra.mxu0 %v452_v4  ;;  %v619_v36 = vmul.f32 %v3446_v34, %v3446_v34  ;;  %v672_v37 = vmul.f32 %v447_v33, %v447_v33  ;;  %v3453_v38 = vld [vmem:[%s3331_s10 + $0x68] sm:$0xff]  ;;  %v446_v39 = vld [vmem:[%s3339_s15 + $0x40] sm:$0xff]  ;;  %v445_v45 = vld [vmem:[%s3339_s15 + $0x38] sm:$0xff]  ;;  %v629_v47 = vmul.f32 %v3465_v44, %v3465_v44  ;;  %v2992_v4 = vmov 1.0   ;;  %p2090_p11 = scmp.ne.s32.totalorder %s4399_s16, 1 }
  0xd7   : > { %2244 = vmatpush3.xpose.msra.mxu1 %v677_v7  ;;  %2189 = vmatprep.subr.mxu0 %v451_v8  ;;  %v3458_v40 = vld [vmem:[%s3331_s10 + $0x28] sm:$0xff]  ;;  %v628_v41 = vmul.f32 %v3453_v38, %v3453_v38  ;;  %v671_v43 = vmul.f32 %v446_v39, %v446_v39  ;;  %v3470_v46 = vld [vmem:[%s3331_s10 + $0x30] sm:$0xff]  ;;  %v670_v49 = vmul.f32 %v445_v45, %v445_v45  ;;  %v3477_v50 = vld [vmem:[%s3331_s10 + $0x78] sm:$0xff] }
  0xd8   : > { %2245 = vmatprep.subr.mxu1 %v2990_v5  ;;  %v620_v42 = vmul.f32 %v3458_v40, %v3458_v40  ;;  %v621_v48 = vmul.f32 %v3470_v46, %v3470_v46  ;;  %v444_v51 = vld [vmem:[%s3339_s15 + $0x30] sm:$0xff]  ;;  %v429_v52 = vld [vmem:[%s3331_s10 + $0x38] sm:$0xff]  ;;  %v630_v53 = vmul.f32 %v3477_v50, %v3477_v50  ;;  %v443_v56 = vld [vmem:[%s3339_s15 + $0x28] sm:$0xff] }
  0xd9   : > { %649 = vadd.xlane.f32.xlu1 %v624_v17  ;;  %647 = vadd.xlane.f32.xlu0 %v623_v18  ;;  %v622_v54 = vmul.f32 %v429_v52, %v429_v52  ;;  %v669_v55 = vmul.f32 %v444_v51, %v444_v51  ;;  %v668_v57 = vmul.f32 %v443_v56, %v443_v56  ;;  %v442_v58 = vld [vmem:[%s3339_s15 + $0x20] sm:$0xff]  ;;  %v441_v60 = vld [vmem:[%s3339_s15 + $0x18] sm:$0xff]  ;;  %v440_v62 = vld [vmem:[%s3339_s15 + $0x10] sm:$0xff] }
  0xda   : > { %2190 = vmatpush3.xpose.msra.mxu0 %v451_v8  ;;  %v667_v59 = vmul.f32 %v442_v58, %v442_v58  ;;  %v666_v61 = vmul.f32 %v441_v60, %v441_v60  ;;  %v665_v63 = vmul.f32 %v440_v62, %v440_v62  ;;  %v439_v0 = vld [vmem:[%s3339_s15 + $0x8] sm:$0xff]  ;;  %v438_v2 = vld [vmem:[%s3339_s15] sm:$0xff]  ;;  %v750_v8 = vshrl.u32 %v749_v6, 7 }
  0xdb   : > { %2246 = vmatpush3.xpose.msra.mxu1 %v676_v13  ;;  %2191 = vmatprep.subr.mxu0 %v450_v14  ;;  %v664_v1 = vmul.f32 %v439_v0, %v439_v0  ;;  %v663_v3 = vmul.f32 %v438_v2, %v438_v2 }
  0xdc   : > { %2247 = vmatprep.subr.mxu1 %v2990_v5 }
  0xdd   : > { %651 = vadd.xlane.f32.xlu1 %v625_v23  ;;  %635 = vadd.xlane.f32.xlu0 %v617_v24 }
  0xde   : > { %2192 = vmatpush3.xpose.msra.mxu0 %v450_v14 }
  0xdf   : > { %2248 = vmatpush3.xpose.msra.mxu1 %v675_v19  ;;  %2193 = vmatprep.subr.mxu0 %v449_v21 }
  0xe0   : > { %2249 = vmatprep.subr.mxu1 %v2990_v5 }
  0xe1   : > { %653 = vadd.xlane.f32.xlu1 %v626_v29  ;;  %637 = vadd.xlane.f32.xlu0 %v618_v30 }
  0xe2   : > { %2194 = vmatpush3.xpose.msra.mxu0 %v449_v21 }
  0xe3   : > { %2250 = vmatpush3.xpose.msra.mxu1 %v674_v25  ;;  %2195 = vmatprep.subr.mxu0 %v448_v27 }
  0xe4   : > { %2251 = vmatprep.subr.mxu1 %v2990_v5 }
  0xe5   : > { %655 = vadd.xlane.f32.xlu1 %v627_v35  ;;  %639 = vadd.xlane.f32.xlu0 %v619_v36 }
  0xe6   : > { %2196 = vmatpush3.xpose.msra.mxu0 %v448_v27 }
  0xe7   : > { %2252 = vmatpush3.xpose.msra.mxu1 %v673_v31  ;;  %2197 = vmatprep.subr.mxu0 %v447_v33 }
  0xe8   : > { %2253 = vmatprep.subr.mxu1 %v2990_v5 }
  0xe9   : > { %657 = vadd.xlane.f32.xlu1 %v628_v41  ;;  %641 = vadd.xlane.f32.xlu0 %v620_v42 }
  0xea   : > { %2198 = vmatpush3.xpose.msra.mxu0 %v447_v33 }
  0xeb   : > { %2254 = vmatpush3.xpose.msra.mxu1 %v672_v37  ;;  %2199 = vmatprep.subr.mxu0 %v446_v39 }
  0xec   : > { %2255 = vmatprep.subr.mxu1 %v2990_v5 }
  0xed   : > { %659 = vadd.xlane.f32.xlu1 %v629_v47  ;;  %643 = vadd.xlane.f32.xlu0 %v621_v48 }
  0xee   : > { %2200 = vmatpush3.xpose.msra.mxu0 %v446_v39 }
  0xef   : > { %2256 = vmatpush3.xpose.msra.mxu1 %v671_v43  ;;  %2201 = vmatprep.subr.mxu0 %v445_v45 }
  0xf0   : > { %2257 = vmatprep.subr.mxu1 %v2990_v5 }
  0xf1   : > { %661 = vadd.xlane.f32.xlu1 %v630_v53  ;;  %645 = vadd.xlane.f32.xlu0 %v622_v54 }
  0xf2   : > { %2202 = vmatpush3.xpose.msra.mxu0 %v445_v45 }
  0xf3   : > { %2258 = vmatpush3.xpose.msra.mxu1 %v670_v49  ;;  %2203 = vmatprep.subr.mxu0 %v444_v51 }
  0xf4   : > { %2259 = vmatprep.subr.mxu1 %v2990_v5 }
  0xf6   : > { %2204 = vmatpush3.xpose.msra.mxu0 %v444_v51 }
  0xf7   : > { %2260 = vmatpush3.xpose.msra.mxu1 %v669_v55  ;;  %2205 = vmatprep.subr.mxu0 %v443_v56 }
  0xf8   : > { %2261 = vmatprep.subr.mxu1 %v2990_v5 }
  0xfa   : > { %2206 = vmatpush3.xpose.msra.mxu0 %v443_v56 }
  0xfb   : > { %2262 = vmatpush3.xpose.msra.mxu1 %v668_v57  ;;  %2207 = vmatprep.subr.mxu0 %v442_v58 }
  0xfc   : > { %2263 = vmatprep.subr.mxu1 %v2990_v5 }
  0xfe   : > { %2208 = vmatpush3.xpose.msra.mxu0 %v442_v58 }
  0xff   : > { %2264 = vmatpush3.xpose.msra.mxu1 %v667_v59  ;;  %2209 = vmatprep.subr.mxu0 %v441_v60 }
 0x100   : > { %2265 = vmatprep.subr.mxu1 %v2990_v5 }
 0x102   : > { %2210 = vmatpush3.xpose.msra.mxu0 %v441_v60 }
 0x103   : > { %2266 = vmatpush3.xpose.msra.mxu1 %v666_v61  ;;  %2211 = vmatprep.subr.mxu0 %v440_v62 }
 0x104   : > { %2267 = vmatprep.subr.mxu1 %v2990_v5 }
 0x106   : > { %2212 = vmatpush3.xpose.msra.mxu0 %v440_v62 }
 0x107   : > { %2268 = vmatpush3.xpose.msra.mxu1 %v665_v63  ;;  %2213 = vmatprep.subr.mxu0 %v439_v0 }
 0x108   : > { %2269 = vmatprep.subr.mxu1 %v2990_v5 }
 0x10a   : > { %2214 = vmatpush3.xpose.msra.mxu0 %v439_v0 }
 0x10b   : > { %2270 = vmatpush3.xpose.msra.mxu1 %v664_v1  ;;  %2215 = vmatprep.subr.mxu0 %v438_v2 }
 0x10c   : > { %2271 = vmatprep.subr.mxu1 %v2990_v5 }
 0x10e   : > { %2216 = vmatpush3.xpose.msra.mxu0 %v438_v2 }
 0x10f   : > { %2272 = vmatpush3.xpose.msra.mxu1 %v663_v3 }
 0x111   : > { %2218 = vmatmul.mubr.f32.vlgmr.msra.gmra.mxu0 %v3400_v10  ;;  %v751_v10 = vsub.s32 0, %v750_v8 }
 0x112   : > { %2274 = vmatmul.mubr.f32.vlgmr.msra.gmra.mxu1 %v2992_v4  ;;  %2220 = vmatprep.mubr.f32.mxu0 %v3422_v22 }
 0x115   : > { %2221 = vmatmul.mubr.f32.gmra.mxu0 %v3434_v28 }
 0x116   : > { %2223 = vmatprep.mubr.f32.mxu0 %v3446_v34 }
 0x119   : > { %2224 = vmatmul.mubr.f32.gmra.mxu0 %v3458_v40 }
 0x11a   : > { %2226 = vmatprep.mubr.f32.mxu0 %v3470_v46 }
 0x11d   : > { %2227 = vmatmul.mubr.f32.gmra.mxu0 %v429_v52 }
 0x11e   : > { %2229 = vmatprep.mubr.f32.mxu0 %v3407_v15 }
 0x121   : > { %2230 = vmatmul.mubr.f32.gmra.mxu0 %v3410_v16 }
 0x122   : > { %2232 = vmatprep.mubr.f32.mxu0 %v3417_v20 }
 0x125   : > { %2233 = vmatmul.mubr.f32.gmra.mxu0 %v3429_v26 }
 0x126   : > { %2235 = vmatprep.mubr.f32.mxu0 %v3441_v32 }
 0x129   : > { %2236 = vmatmul.mubr.f32.gmra.mxu0 %v3453_v38 }
 0x12a   : > { %2238 = vmatprep.mubr.f32.mxu0 %v3465_v44 }
 0x12d   : > { %2239 = vmatmul.mubr.f32.gmra.mxu0 %v3477_v50 }
 0x15e   : > { %v3511_v5 = vpop.xlane.xlu1 %633  ;;  %v632_v7 = vpop.xlane.xlu0 %631 }
 0x162   : > { %v650_v9 = vpop.xlane.xlu1 %649  ;;  %v648_v11 = vpop.xlane.xlu0 %647 }
 0x166   : > { %v652_v13 = vpop.xlane.xlu1 %651  ;;  %v636_v21 = vpop.xlane.xlu0 %635 }
 0x16a   : > { %v654_v24 = vpop.xlane.xlu1 %653  ;;  %v638_v29 = vpop.xlane.xlu0 %637 }
 0x16e   : > { %v656_v31 = vpop.xlane.xlu1 %655  ;;  %v3539_v34 = vpop.xlane.xlu0 %639 }
 0x172   : > { %v658_v38 = vpop.xlane.xlu1 %657  ;;  %v642_v48 = vpop.xlane.xlu0 %641 }
 0x176   : > { %v660_v51 = vpop.xlane.xlu1 %659  ;;  %v644_v1 = vpop.xlane.xlu0 %643 }
 0x17a   : > { %v662_v6 = vpop.xlane.xlu1 %661 }
 0x1d1   : > { %v3513_v12 = vpop.f32.mrf.mxu0 }
 0x1d2   : > { %v745_v14 = vpop.f32.mrf.mxu1 }
 0x1d3   : > { %v3515_v15 = vrot.slane %v745_v14, %v751_v10  ;;  %v3517_v16 = vpop.f32.mrf.mxu0 }
 0x1d4   : > { %v769_v17 = vmul.f32 %v3517_v16, %v3517_v16  ;;  %v2275_v18 = vpop.f32.mrf.mxu1 }
 0x1d5   : > { %v753_v19 = vmul.f32 %v3515_v15, %v632_v7  ;;  %v3522_v20 = vpop.f32.mrf.mxu0  ;;  %v762_v35 = vmul.f32 %v3515_v15, %v650_v9  ;;  %v761_v41 = vmul.f32 %v3515_v15, %v648_v11  ;;  %v764_v44 = vmul.f32 %v3515_v15, %v654_v24 }
 0x1d6   : > { %v756_v52 = vmul.f32 %v3515_v15, %v638_v29  ;;  %v772_v53 = vmul.f32 %v3522_v20, %v3522_v20  ;;  %v763_v55 = vmul.f32 %v3515_v15, %v652_v13  ;;  %v755_v0 = vmul.f32 %v3515_v15, %v636_v21 }
 0x1d7   : > { %v785_v22 = vsub.f32 %v753_v19, %v769_v17  ;;  %v3524_v23 = vpop.f32.mrf.mxu0  ;;  %v766_v2 = vmul.f32 %v3515_v15, %v658_v38  ;;  %v770_v13 = vmul.f32 %v3513_v12, %v3513_v12  ;;  %v768_v17 = vmul.f32 %v3515_v15, %v662_v6 }
 0x1d8   : > { %v771_v56 = vmul.f32 %v3524_v23, %v3524_v23  ;;  %v788_v63 = vsub.f32 %v756_v52, %v772_v53  ;;  %v758_v24 = vmul.f32 %v3515_v15, %v642_v48 }
 0x1d9   : > { %v801_v25 = vmax.f32 %v785_v22, 0.0  ;;  %v3526_v26 = vpop.f32.mrf.mxu0 }
 0x1da   : > { %v787_v7 = vsub.f32 %v755_v0, %v771_v56  ;;  %v804_v14 = vmax.f32 %v788_v63, 0.0  ;;  %v774_v18 = vmul.f32 %v3526_v26, %v3526_v26  ;;  %v759_v56 = vmul.f32 %v3515_v15, %v644_v1 }
 0x1db   : > { %v3528_v27 = vpop.f32.mrf.mxu0  ;;  %v3530_v28 = vadd.f32 1e-08, %v801_v25  ;;  %v765_v25 = vmul.f32 %v3515_v15, %v656_v31 }
 0x1dc   : > { %v803_v22 = vmax.f32 %v787_v7, 0.0 }
 0x1dd   : > { %v3532_v30 = vpop.f32.mrf.mxu0  ;;  %2555 = vrsqrt.f32 %v3530_v28  ;;  %vm835_vm2 = vcmp.eq.f32.partialorder %v3530_v28, inf  ;;  %v838_v29 = vand.u32 2147483648, %v3530_v28  ;;  %vm837_vm3 = vcmp.eq.f32.partialorder %v3530_v28, 0.0 }
 0x1df   : > { %v3534_v32 = vpop.f32.mrf.mxu0 }
 0x1e1   : > { %v3537_v33 = vpop.f32.mrf.mxu0 }
 0x1e2   : > { %v778_v36 = vmul.f32 %v3537_v33, %v3537_v33 }
 0x1e3   : > { %v3544_v37 = vpop.f32.mrf.mxu0 }
 0x1e4   : > { %v794_v39 = vsub.f32 %v762_v35, %v778_v36  ;;  %v777_v42 = vmul.f32 %v3544_v37, %v3544_v37  ;;  %v646_v35 = vpop.xlane.xlu0 %645 }
 0x1e5   : > { %v3546_v40 = vpop.f32.mrf.mxu0 }
 0x1e6   : > { %v780_v43 = vmul.f32 %v3546_v40, %v3546_v40  ;;  %v810_v46 = vmax.f32 %v794_v39, 0.0  ;;  %v793_v47 = vsub.f32 %v761_v41, %v777_v42  ;;  %v754_v39 = vmul.f32 %v3515_v15, %v3511_v5 }
 0x1e7   : > { %v3554_v45 = vpop.f32.mrf.mxu0  ;;  %v3599_v41 = vadd.f32 1e-08, %v804_v14  ;;  %v3610_v5 = vmul.f32 %v3515_v15, %v646_v35 }
 0x1e8   : > { %v796_v49 = vsub.f32 %v764_v44, %v780_v43  ;;  %v779_v50 = vmul.f32 %v3554_v45, %v3554_v45  ;;  %v3566_v57 = vadd.f32 1e-08, %v810_v46  ;;  %v809_v58 = vmax.f32 %v793_v47, 0.0 }
 0x1e9   : > { %v3561_v54 = vpop.f32.mrf.mxu0  ;;  %v790_v44 = vsub.f32 %v758_v24, %v774_v18  ;;  %v773_v46 = vmul.f32 %v3528_v27, %v3528_v27  ;;  %v945_v47 = vmul.f32 0.0, %v3517_v16  ;;  %v786_v53 = vsub.f32 %v754_v39, %v770_v13 }
 0x1ea   : > { %v2556_v59 = vpop.eup %2555  ;;  %v812_v60 = vmax.f32 %v796_v49, 0.0  ;;  %v795_v61 = vsub.f32 %v763_v55, %v779_v50  ;;  %v782_v62 = vmul.f32 %v3561_v54, %v3561_v54  ;;  %2557 = vrsqrt.f32 %v3566_v57 }
 0x1eb   : > { %v3573_v3 = vpop.f32.mrf.mxu0  ;;  %v834_v4 = vmul.f32 %v2556_v59, %v3530_v28  ;;  %v3576_v8 = vadd.f32 1e-08, %v809_v58  ;;  %v757_v49 = vmul.f32 %v3515_v15, %v3539_v34  ;;  %v767_v16 = vmul.f32 %v3515_v15, %v660_v51 }
 0x1ec   : > { %v3578_v9 = vadd.f32 1e-08, %v812_v60  ;;  %v811_v10 = vmax.f32 %v795_v61, 0.0  ;;  %v798_v11 = vsub.f32 %v766_v2, %v782_v62  ;;  %v781_v42 = vmul.f32 %v3573_v3, %v3573_v3 }
 0x1ed   : > { %2559 = vrsqrt.f32 %v3576_v8  ;;  %v3588_v19 = vpop.f32.mrf.mxu0  ;;  %v836_v21 = vsel %vm835_vm2, %v3530_v28, %v834_v4  ;;  %v3612_v28 = vadd.f32 1e-08, %v803_v22  ;;  %v806_v59 = vmax.f32 %v790_v44, 0.0 }
 0x1ee   : > { %2561 = vrsqrt.f32 %v3578_v9  ;;  %v3594_v36 = vadd.f32 1e-08, %v811_v10  ;;  %v814_v38 = vmax.f32 %v798_v11, 0.0  ;;  %v784_v43 = vmul.f32 %v3588_v19, %v3588_v19 }
 0x1ef   : > { %v839_v31 = vsel %vm837_vm3, %v838_v29, %v836_v21  ;;  %v797_v50 = vsub.f32 %v765_v25, %v781_v42  ;;  %v789_v60 = vsub.f32 %v757_v49, %v773_v46  ;;  %v3622_v62 = vpop.f32.mrf.mxu0  ;;  %v775_v34 = vmul.f32 %v3534_v32, %v3534_v32 }
 0x1f0   : > { %2563 = vrsqrt.f32 %v3594_v36  ;;  %v3614_v48 = vadd.f32 1e-08, %v814_v38  ;;  %v800_v52 = vsub.f32 %v768_v17, %v784_v43  ;;  %v961_v55 = vadd.f32 %v945_v47, %v839_v31 }
 0x1f1   : > { %v813_v61 = vmax.f32 %v797_v50, 0.0  ;;  %vm898_vm4 = vcmp.eq.f32.partialorder %v3566_v57, inf  ;;  %v901_v15 = vand.u32 2147483648, %v3566_v57  ;;  %v802_v1 = vmax.f32 %v786_v53, 0.0 }
 0x1f2   : > { %2565 = vrsqrt.f32 %v3614_v48  ;;  %v816_v0 = vmax.f32 %v800_v52, 0.0  ;;  %v783_v6 = vmul.f32 %v3622_v62, %v3622_v62  ;;  %v3637_v7 = vmul.f32 0.088388346, %v961_v55 }
 0x1f3   : > { %2567 = vrsqrt.f32 %v3599_v41  ;;  %v3630_v51 = vadd.f32 1e-08, %v813_v61  ;;  %v3639_v11 = vadd.f32 1e-08, %v806_v59  ;;  %v776_v13 = vmul.f32 %v3532_v30, %v3532_v30 }
 0x1f4   : > { %2569 = vrsqrt.f32 %v3612_v28  ;;  %v3633_v4 = vadd.f32 1e-08, %v816_v0  ;;  %vm900_vm5 = vcmp.eq.f32.partialorder %v3566_v57, 0.0  ;;  %v805_v17 = vmax.f32 %v789_v60, 0.0  ;;  %1053 = vmax.xlane.f32.xlu0 %v3637_v7 }
 0x1f5   : > { %2571 = vrsqrt.f32 %v3630_v51  ;;  %v791_v18 = vsub.f32 %v759_v56, %v775_v34  ;;  %v954_v24 = vmul.f32 0.0, %v3537_v33  ;;  %vm891_vm6 = vcmp.eq.f32.partialorder %v3576_v8, inf }
 0x1f6   : > { %2573 = vrsqrt.f32 %v3633_v4  ;;  %v894_v29 = vand.u32 2147483648, %v3576_v8  ;;  %v799_v35 = vsub.f32 %v767_v16, %v783_v6  ;;  %v3653_v38 = vadd.f32 1e-08, %v802_v1 }
 0x1f7   : > { %v2558_v58 = vpop.eup %2557  ;;  %v792_v39 = vsub.f32 %v3610_v5, %v776_v13  ;;  %vm893_vm7 = vcmp.eq.f32.partialorder %v3576_v8, 0.0  ;;  %vm912_vm8 = vcmp.eq.f32.partialorder %v3578_v9, inf  ;;  %v953_v44 = vmul.f32 0.0, %v3544_v37 }
 0x1f8   : > { %v897_v63 = vmul.f32 %v2558_v58, %v3566_v57  ;;  %v815_v31 = vmax.f32 %v799_v35, 0.0  ;;  %2575 = vrsqrt.f32 %v3653_v38  ;;  %v3663_v49 = vadd.f32 1e-08, %v805_v17 }
 0x1f9   : > { %2577 = vrsqrt.f32 %v3639_v11  ;;  %v807_v5 = vmax.f32 %v791_v18, 0.0  ;;  %vm914_vm9 = vcmp.eq.f32.partialorder %v3578_v9, 0.0  ;;  %v808_v16 = vmax.f32 %v792_v39, 0.0 }
 0x1fa   : > { %v899_v2 = vsel %vm898_vm4, %v3566_v57, %v897_v63  ;;  %v2560_v10 = vpop.eup %2559  ;;  %v3666_v50 = vadd.f32 1e-08, %v815_v31  ;;  %vm905_vm10 = vcmp.eq.f32.partialorder %v3594_v36, inf  ;;  %v3674_v59 = vmul.f32 0.0, %v3513_v12 }
 0x1fb   : > { %v2562_v14 = vpop.eup %2561  ;;  %v902_v21 = vsel %vm900_vm5, %v901_v15, %v899_v2  ;;  %v890_v22 = vmul.f32 %v2560_v10, %v3576_v8  ;;  %v956_v60 = vmul.f32 0.0, %v3546_v40  ;;  %v3684_v63 = vadd.f32 1e-08, %v807_v5 }
 0x1fc   : > { %v911_v25 = vmul.f32 %v2562_v14, %v3578_v9  ;;  %v970_v42 = vadd.f32 %v954_v24, %v902_v21  ;;  %2579 = vrsqrt.f32 %v3666_v50  ;;  %v908_v0 = vand.u32 2147483648, %v3594_v36 }
 0x1fd   : > { %v892_v57 = vsel %vm891_vm6, %v3576_v8, %v890_v22  ;;  %v2564_v43 = vpop.eup %2563  ;;  %v915_v8 = vand.u32 2147483648, %v3578_v9  ;;  %2581 = vrsqrt.f32 %v3663_v49  ;;  %vm907_vm11 = vcmp.eq.f32.partialorder %v3594_v36, 0.0 }
 0x1fe   : > { %v895_v33 = vsel %vm893_vm7, %v894_v29, %v892_v57  ;;  %v913_v46 = vsel %vm912_vm8, %v3578_v9, %v911_v25  ;;  %v904_v47 = vmul.f32 %v2564_v43, %v3594_v36  ;;  %v3669_v55 = vmul.f32 0.088388346, %v970_v42 }
 0x1ff   : > { %v2566_v52 = vpop.eup %2565  ;;  %v969_v53 = vadd.f32 %v953_v44, %v895_v33  ;;  %v916_v37 = vsel %vm914_vm9, %v915_v8, %v913_v46  ;;  %v3681_v9 = vmul.f32 0.0, %v3522_v20  ;;  %vm856_vm12 = vcmp.eq.f32.partialorder %v3599_v41, inf }
 0x200   : > { %v2568_v56 = vpop.eup %2567  ;;  %v906_v61 = vsel %vm905_vm10, %v3594_v36, %v904_v47  ;;  %v925_v34 = vmul.f32 %v2566_v52, %v3614_v48  ;;  %1071 = vmax.xlane.f32.xlu1 %v3669_v55  ;;  %v972_v15 = vadd.f32 %v956_v60, %v916_v37  ;;  %v3692_v2 = vadd.f32 1e-08, %v808_v16 }
 0x201   : > { %v2570_v58 = vpop.eup %2569  ;;  %v855_v12 = vmul.f32 %v2568_v56, %v3599_v41  ;;  %v3689_v40 = vmul.f32 0.088388346, %v969_v53  ;;  %v909_v20 = vsel %vm907_vm11, %v908_v0, %v906_v61  ;;  %vm926_vm13 = vcmp.eq.f32.partialorder %v3614_v48, inf }
 0x202   : > { %v2572_v1 = vpop.eup %2571  ;;  %vm858_vm14 = vcmp.eq.f32.partialorder %v3599_v41, 0.0  ;;  %v955_v6 = vmul.f32 0.0, %v3554_v45  ;;  %v927_v10 = vsel %vm926_vm13, %v3614_v48, %v925_v34  ;;  %v859_v14 = vand.u32 2147483648, %v3599_v41 }
 0x203   : > { %v918_v13 = vmul.f32 %v2572_v1, %v3630_v51  ;;  %v2574_v36 = vpop.eup %2573  ;;  %vm849_vm15 = vcmp.eq.f32.partialorder %v3612_v28, inf  ;;  %2583 = vrsqrt.f32 %v3684_v63  ;;  %v929_v17 = vand.u32 2147483648, %v3614_v48 }
 0x204   : > { %1069 = vmax.xlane.f32.xlu1 %v3689_v40  ;;  %v857_v18 = vsel %vm856_vm12, %v3599_v41, %v855_v12  ;;  %v971_v21 = vadd.f32 %v955_v6, %v909_v20  ;;  %vm928_vm0 = vcmp.eq.f32.partialorder %v3614_v48, 0.0  ;;  %v3706_v45 = vmul.f32 0.088388346, %v972_v15 }
 0x205   : > { %vm851_vm1 = vcmp.eq.f32.partialorder %v3612_v28, 0.0  ;;  %2585 = vrsqrt.f32 %v3692_v2  ;;  %v930_v22 = vsel %vm928_vm0, %v929_v17, %v927_v10  ;;  %vm919_vm2 = vcmp.eq.f32.partialorder %v3630_v51, inf  ;;  %v2576_v24 = vpop.eup %2575 }
 0x206   : > { %v848_v25 = vmul.f32 %v2570_v58, %v3612_v28  ;;  %v958_v57 = vmul.f32 0.0, %v3561_v54  ;;  %v920_v29 = vsel %vm919_vm2, %v3630_v51, %v918_v13  ;;  %v939_v35 = vmul.f32 %v2574_v36, %v3633_v4  ;;  %v2578_v39 = vpop.eup %2577 }
 0x207   : > { %v2993_v48 = vmov 0   ;;  %v860_v42 = vsel %vm858_vm14, %v859_v14, %v857_v18  ;;  %vm921_vm3 = vcmp.eq.f32.partialorder %v3630_v51, 0.0  ;;  %v922_v43 = vand.u32 2147483648, %v3630_v51 }
 0x208   : > { %1075 = vmax.xlane.f32.xlu1 %v3706_v45  ;;  %2553 = vset.pattern.permute.xlu0 %v2993_v48  ;;  %v841_v33 = vmul.f32 %v2576_v24, %v3653_v38  ;;  %v974_v54 = vadd.f32 %v958_v57, %v930_v22  ;;  %vm842_vm4 = vcmp.eq.f32.partialorder %v3653_v38, inf  ;;  %v845_v31 = vand.u32 2147483648, %v3653_v38 }
 0x209   : > { %2554 = vset.pattern.permute.xlu1 %v2993_v48  ;;  %v3723_v44 = vmul.f32 0.088388346, %v971_v21  ;;  %v923_v46 = vsel %vm921_vm3, %v922_v43, %v920_v29  ;;  %vm940_vm5 = vcmp.eq.f32.partialorder %v3633_v4, inf  ;;  %vm844_vm6 = vcmp.eq.f32.partialorder %v3653_v38, 0.0  ;;  %v2580_v47 = vpop.eup %2579 }
 0x20a   : > { %v843_v41 = vsel %vm842_vm4, %v3653_v38, %v841_v33  ;;  %v850_v51 = vsel %vm849_vm15, %v3612_v28, %v848_v25  ;;  %v957_v5 = vmul.f32 0.0, %v3573_v3  ;;  %v941_v8 = vsel %vm940_vm5, %v3633_v4, %v939_v35  ;;  %v2582_v37 = vpop.eup %2581 }
 0x20b   : > { %v846_v52 = vsel %vm844_vm6, %v845_v31, %v843_v41  ;;  %v869_v53 = vmul.f32 %v2578_v39, %v3639_v11  ;;  %v943_v56 = vand.u32 2147483648, %v3633_v4  ;;  %v932_v16 = vmul.f32 %v2580_v47, %v3666_v50 }
 0x20c   : > { %1073 = vmax.xlane.f32.xlu1 %v3723_v44  ;;  %v962_v38 = vadd.f32 %v3674_v59, %v846_v52  ;;  %v852_v58 = vand.u32 2147483648, %v3612_v28  ;;  %v973_v60 = vadd.f32 %v957_v5, %v923_v46  ;;  %vm942_vm7 = vcmp.eq.f32.partialorder %v3633_v4, 0.0 }
 0x20d   : > { %v3740_v3 = vmul.f32 0.088388346, %v974_v54  ;;  %v964_v61 = vadd.f32 %v3681_v9, %v860_v42  ;;  %v944_v34 = vsel %vm942_vm7, %v943_v56, %v941_v8  ;;  %vm933_vm8 = vcmp.eq.f32.partialorder %v3666_v50, inf }
 0x20e   : > { %v3744_v0 = vmul.f32 0.088388346, %v962_v38  ;;  %v853_v12 = vsel %vm851_vm1, %v852_v58, %v850_v51  ;;  %vm870_vm9 = vcmp.eq.f32.partialorder %v3639_v11, inf  ;;  %v960_v59 = vmul.f32 0.0, %v3588_v19  ;;  %v469_v38 = vld [vmem:[%s3347_s27 + $0x78] sm:$0xff]  ;;  %v3823_v58 = vld [vmem:[#allocation2 + $0x40] sm:$0xff] }
 0x20f   : > { %v934_v15 = vsel %vm933_vm8, %v3666_v50, %v932_v16  ;;  %v947_v4 = vmul.f32 0.0, %v3524_v23  ;;  %v871_v9 = vsel %vm870_vm9, %v3639_v11, %v869_v53  ;;  %v862_v1 = vmul.f32 %v2582_v37, %v3663_v49  ;;  %v3816_v53 = vld [vmem:[#allocation2 + $0x48] sm:$0xff]  ;;  %v468_v37 = vld [vmem:[%s3347_s27 + $0x70] sm:$0xff]  ;;  %2276 = vmatprep.subr.mxu0 %v469_v38  ;;  %2332 = vmatprep.subr.mxu1 %v469_v38 }
 0x210   : > { %1079 = vmax.xlane.f32.xlu1 %v3740_v3  ;;  %v936_v20 = vand.u32 2147483648, %v3666_v50  ;;  %1055 = vmax.xlane.f32.xlu0 %v3744_v0  ;;  %v2584_v28 = vpop.eup %2583  ;;  %v873_v6 = vand.u32 2147483648, %v3639_v11  ;;  %v976_v10 = vadd.f32 %v960_v59, %v944_v34  ;;  %vm935_vm10 = vcmp.eq.f32.partialorder %v3666_v50, 0.0  ;;  %v466_v59 = vld [vmem:[%s3347_s27 + $0x60] sm:$0xff] }
 0x211   : > { %v3759_v19 = vmul.f32 0.088388346, %v973_v60  ;;  %v963_v13 = vadd.f32 %v947_v4, %v853_v12  ;;  %vm872_vm11 = vcmp.eq.f32.partialorder %v3639_v11, 0.0  ;;  %v3762_v36 = vmul.f32 0.088388346, %v964_v61  ;;  %2277 = vmatpush3.msra.mxu0 %v469_v38  ;;  %2348 = vmatpush3.msra.mxu1 %v469_v38  ;;  %v467_v12 = vld [vmem:[%s3347_s27 + $0x68] sm:$0xff] }
 0x212   : > { %v937_v23 = vsel %vm935_vm10, %v936_v20, %v934_v15  ;;  %v2586_v14 = vpop.eup %2585  ;;  %v874_v17 = vsel %vm872_vm11, %v873_v6, %v871_v9  ;;  %vm863_vm12 = vcmp.eq.f32.partialorder %v3663_v49, inf  ;;  %v959_v18 = vmul.f32 0.0, %v3622_v62  ;;  %2278 = vmatprep.subr.mxu0 %v468_v37  ;;  %2333 = vmatprep.subr.mxu1 %v468_v37  ;;  %v3834_v15 = vld [vmem:[#allocation2 + $0x58] sm:$0xff]  ;;  %v464_v20 = vld [vmem:[%s3347_s27 + $0x50] sm:$0xff] }
 0x213   : > { %v950_v21 = vmul.f32 0.0, %v3526_v26  ;;  %v864_v50 = vsel %vm863_vm12, %v3663_v49, %v862_v1  ;;  %v876_v22 = vmul.f32 %v2584_v28, %v3684_v63  ;;  %v866_v11 = vand.u32 2147483648, %v3663_v49  ;;  %2279 = vmatpush3.msra.mxu0 %v468_v37  ;;  %2349 = vmatpush3.msra.mxu1 %v468_v37  ;;  %v465_v1 = vld [vmem:[%s3347_s27 + $0x58] sm:$0xff]  ;;  %v3843_v28 = vld [vmem:[#allocation2 + $0x50] sm:$0xff] }
 0x214   : > { %1077 = vmax.xlane.f32.xlu1 %v3759_v19  ;;  %1059 = vmax.xlane.f32.xlu0 %v3762_v36  ;;  %v975_v24 = vadd.f32 %v959_v18, %v937_v23  ;;  %v3772_v25 = vmul.f32 0.088388346, %v976_v10  ;;  %vm865_vm13 = vcmp.eq.f32.partialorder %v3663_v49, 0.0  ;;  %v3775_v29 = vmul.f32 0.088388346, %v963_v13  ;;  %v463_v23 = vld [vmem:[%s3347_s27 + $0x48] sm:$0xff] }
 0x215   : > { %v966_v57 = vadd.f32 %v950_v21, %v874_v17  ;;  %v867_v62 = vsel %vm865_vm13, %v866_v11, %v864_v50  ;;  %vm877_vm14 = vcmp.eq.f32.partialorder %v3684_v63, inf  ;;  %v949_v26 = vmul.f32 0.0, %v3528_v27  ;;  %2280 = vmatprep.subr.mxu0 %v467_v12  ;;  %2334 = vmatprep.subr.mxu1 %v467_v12  ;;  %v1038_v17 = vld [vmem:[#allocation2 + $0x8] sm:$0xff]  ;;  %v3860_v11 = vld [vmem:[#allocation2 + $0x60] sm:$0xff]  ;;  %v3898_v37 = vld [vmem:[#allocation2 + $0x70] sm:$0xff] }
 0x216   : > { %v883_v35 = vmul.f32 %v2586_v14, %v3692_v2  ;;  %v878_v48 = vsel %vm877_vm14, %v3684_v63, %v876_v22  ;;  %v880_v39 = vand.u32 2147483648, %v3684_v63  ;;  %v3784_v42 = vmul.f32 0.088388346, %v975_v24  ;;  %2281 = vmatpush3.msra.mxu0 %v467_v12  ;;  %2350 = vmatpush3.msra.mxu1 %v467_v12  ;;  %v3853_v14 = vld [vmem:[#allocation2 + $0x68] sm:$0xff]  ;;  %v3862_v24 = vld [vmem:[#allocation2 + $0x18] sm:$0xff] }
 0x217   : > { %v965_v49 = vadd.f32 %v949_v26, %v867_v62  ;;  %vm879_vm15 = vcmp.eq.f32.partialorder %v3684_v63, 0.0  ;;  %v3787_v43 = vmul.f32 0.088388346, %v966_v57  ;;  %vm884_vm0 = vcmp.eq.f32.partialorder %v3692_v2, inf  ;;  %2282 = vmatprep.subr.mxu0 %v466_v59  ;;  %2335 = vmatprep.subr.mxu1 %v466_v59 }
 0x218   : > { %1083 = vmax.xlane.f32.xlu1 %v3772_v25  ;;  %1057 = vmax.xlane.f32.xlu0 %v3775_v29  ;;  %v881_v33 = vsel %vm879_vm15, %v880_v39, %v878_v48  ;;  %v885_v27 = vsel %vm884_vm0, %v3692_v2, %v883_v35  ;;  %v951_v54 = vmul.f32 0.0, %v3534_v32  ;;  %v887_v31 = vand.u32 2147483648, %v3692_v2  ;;  %v462_v35 = vld [vmem:[%s3347_s27 + $0x40] sm:$0xff]  ;;  %v461_v48 = vld [vmem:[%s3347_s27 + $0x38] sm:$0xff] }
 0x219   : > { %vm886_vm1 = vcmp.eq.f32.partialorder %v3692_v2, 0.0  ;;  %v3796_v41 = vmul.f32 0.088388346, %v965_v49  ;;  %v952_v47 = vmul.f32 0.0, %v3532_v30  ;;  %v3806_v2 = vld [vmem:[#allocation2] sm:$0xff]  ;;  %vm1357_vm2 = vcmask 7168   ;;  %2283 = vmatpush3.msra.mxu0 %v466_v59  ;;  %2351 = vmatpush3.msra.mxu1 %v466_v59 }
 0x21a   : > { %v967_v46 = vadd.f32 %v951_v54, %v881_v33  ;;  %v888_v63 = vsel %vm886_vm1, %v887_v31, %v885_v27  ;;  %2284 = vmatprep.subr.mxu0 %v465_v1  ;;  %2336 = vmatprep.subr.mxu1 %v465_v1  ;;  %v3878_v54 = vld [vmem:[#allocation2 + $0x78] sm:$0xff]  ;;  %v3880_v31 = vld [vmem:[#allocation2 + $0x10] sm:$0xff] }
 0x21b   : > { %v968_v51 = vadd.f32 %v952_v47, %v888_v63  ;;  %2285 = vmatpush3.msra.mxu0 %v465_v1  ;;  %2352 = vmatpush3.msra.mxu1 %v465_v1  ;;  %v460_v47 = vld [vmem:[%s3347_s27 + $0x30] sm:$0xff]  ;;  %v458_v1 = vld [vmem:[%s3347_s27 + $0x20] sm:$0xff] }
 0x21c   : > { %1081 = vmax.xlane.f32.xlu1 %v3784_v42  ;;  %1063 = vmax.xlane.f32.xlu0 %v3787_v43  ;;  %v3800_v5 = vmul.f32 0.088388346, %v967_v46 }
 0x21d   : > { %v3803_v32 = vmul.f32 0.088388346, %v968_v51  ;;  %2286 = vmatprep.subr.mxu0 %v464_v20  ;;  %2337 = vmatprep.subr.mxu1 %v464_v20  ;;  %v459_v51 = vld [vmem:[%s3347_s27 + $0x28] sm:$0xff] }
 0x21e   : > { %2287 = vmatpush3.msra.mxu0 %v464_v20  ;;  %2353 = vmatpush3.msra.mxu1 %v464_v20  ;;  %v457_v20 = vld [vmem:[%s3347_s27 + $0x18] sm:$0xff] }
 0x21f   : > { %2288 = vmatprep.subr.mxu0 %v463_v23  ;;  %2338 = vmatprep.subr.mxu1 %v463_v23 }
 0x220   : > { %1061 = vmax.xlane.f32.xlu0 %v3796_v41  ;;  %2289 = vmatpush3.msra.mxu0 %v463_v23 }
 0x221   : > { %2354 = vmatpush3.msra.mxu1 %v463_v23  ;;  %2290 = vmatprep.subr.mxu0 %v462_v35 }
 0x222   : > { %2339 = vmatprep.subr.mxu1 %v462_v35  ;;  %2291 = vmatpush3.msra.mxu0 %v462_v35 }
 0x223   : > { %2355 = vmatpush3.msra.mxu1 %v462_v35  ;;  %2292 = vmatprep.subr.mxu0 %v461_v48 }
 0x224   : > { %1065 = vmax.xlane.f32.xlu0 %v3800_v5  ;;  %2293 = vmatpush3.msra.mxu0 %v461_v48 }
 0x225   : > { %2294 = vmatprep.subr.mxu0 %v460_v47  ;;  %2340 = vmatprep.subr.mxu1 %v461_v48 }
 0x226   : > { %2295 = vmatpush3.msra.mxu0 %v460_v47  ;;  %2356 = vmatpush3.msra.mxu1 %v461_v48 }
 0x227   : > { %2296 = vmatprep.subr.mxu0 %v459_v51  ;;  %2341 = vmatprep.subr.mxu1 %v460_v47 }
 0x228   : > { %1067 = vmax.xlane.f32.xlu0 %v3803_v32  ;;  %2297 = vmatpush3.msra.mxu0 %v459_v51 }
 0x229   : > { %2298 = vmatprep.subr.mxu0 %v458_v1  ;;  %2357 = vmatpush3.msra.mxu1 %v460_v47 }
 0x22a   : > { %2299 = vmatpush3.msra.mxu0 %v458_v1  ;;  %2342 = vmatprep.subr.mxu1 %v459_v51 }
 0x22b   : > { %2300 = vmatprep.subr.mxu0 %v457_v20  ;;  %2358 = vmatpush3.msra.mxu1 %v459_v51 }
 0x22c   : > { %2301 = vmatpush3.msra.mxu0 %v457_v20  ;;  %2343 = vmatprep.subr.mxu1 %v458_v1 }
 0x22d   : > { %2359 = vmatpush3.msra.mxu1 %v458_v1 }
 0x22e   : > { %2344 = vmatprep.subr.mxu1 %v457_v20 }
 0x22f   : > { %2360 = vmatpush3.msra.mxu1 %v457_v20  ;;  %v996_v20 = vand.u32 2147483647, %v3775_v29 }
 0x27d   : > { %v1054_v8 = vpop.xlane.xlu0 %1053 }
 0x27e   : > { %v3809_v52 = vmax.f32 %v3806_v2, %v1054_v8 }
 0x280   : > { %v1101_v30 = vsub.f32 %v3806_v2, %v3809_v52  ;;  %1663 = vst.msk [vmem:[#allocation2] sm:$0xff] %vm1357_vm2, %v3809_v52  ;;  %1151 = vperm.xlu0 %2553, %v3809_v52  }
 0x289   : > { %v1072_v56 = vpop.xlane.xlu1 %1071 }
 0x28a   : > { %v3819_v16 = vmax.f32 %v3816_v53, %v1072_v56 }
 0x28c   : > { %v1110_v60 = vsub.f32 %v3816_v53, %v3819_v16  ;;  %1672 = vst.msk [vmem:[#allocation2 + $0x48] sm:$0xff] %vm1357_vm2, %v3819_v16 }
 0x28d   : > { %v1070_v61 = vpop.xlane.xlu1 %1069 }
 0x28e   : > { %v3830_v34 = vmax.f32 %v3823_v58, %v1070_v61  ;;  %v3900_v61 = vld [vmem:[#allocation2 + $0x28] sm:$0xff] }
 0x290   : > { %1671 = vst.msk [vmem:[#allocation2 + $0x40] sm:$0xff] %vm1357_vm2, %v3830_v34 }
 0x291   : > { %v1076_v4 = vpop.xlane.xlu1 %1075 }
 0x292   : > { %v3839_v9 = vmax.f32 %v3834_v15, %v1076_v4 }
 0x294   : > { %v1112_v6 = vsub.f32 %v3834_v15, %v3839_v9  ;;  %1674 = vst.msk [vmem:[#allocation2 + $0x58] sm:$0xff] %vm1357_vm2, %v3839_v9 }
 0x295   : > { %v1074_v10 = vpop.xlane.xlu1 %1073 }
 0x296   : > { %v3850_v13 = vmax.f32 %v3843_v28, %v1074_v10 }
 0x298   : > { %1673 = vst.msk [vmem:[#allocation2 + $0x50] sm:$0xff] %vm1357_vm2, %v3850_v13 }
 0x299   : > { %v1080_v18 = vpop.xlane.xlu1 %1079  ;;  %v1056_v21 = vpop.xlane.xlu0 %1055 }
 0x29a   : > { %v3858_v50 = vmax.f32 %v3853_v14, %v1080_v18  ;;  %v1086_v22 = vmax.f32 %v1038_v17, %v1056_v21  ;;  %v456_v18 = vld [vmem:[%s3347_s27 + $0x10] sm:$0xff]  ;;  %v1041_v21 = vld [vmem:[#allocation2 + $0x20] sm:$0xff] }
 0x29b   : > { %2302 = vmatprep.subr.mxu0 %v456_v18  ;;  %2345 = vmatprep.subr.mxu1 %v456_v18 }
 0x29c   : > { %1676 = vst.msk [vmem:[#allocation2 + $0x68] sm:$0xff] %vm1357_vm2, %v3858_v50  ;;  %1216 = vperm.xlu0 %2553, %v3858_v50   ;;  %v1102_v62 = vsub.f32 %v1038_v17, %v1086_v22  ;;  %1664 = vst.msk [vmem:[#allocation2 + $0x8] sm:$0xff] %vm1357_vm2, %v1086_v22  ;;  %1156 = vperm.xlu1 %2554, %v1086_v22  }
 0x29d   : > { %v1078_v26 = vpop.xlane.xlu1 %1077  ;;  %v1060_v39 = vpop.xlane.xlu0 %1059  ;;  %2303 = vmatpush3.msra.mxu0 %v456_v18  ;;  %2361 = vmatpush3.msra.mxu1 %v456_v18 }
 0x29e   : > { %v3873_v49 = vmax.f32 %v3860_v11, %v1078_v26  ;;  %v1119_v33 = vmul.f32 1.442695, %v1102_v62  ;;  %v3876_v27 = vmax.f32 %v3862_v24, %v1060_v39  ;;  %v455_v26 = vld [vmem:[%s3347_s27 + $0x8] sm:$0xff]  ;;  %v1043_v39 = vld [vmem:[#allocation2 + $0x30] sm:$0xff] }
 0x29f   : > { %2304 = vmatprep.subr.mxu0 %v455_v26  ;;  %2346 = vmatprep.subr.mxu1 %v455_v26 }
 0x2a0   : > { %1675 = vst.msk [vmem:[#allocation2 + $0x60] sm:$0xff] %vm1357_vm2, %v3873_v49  ;;  %1211 = vperm.xlu0 %2553, %v3873_v49   ;;  %v1104_v46 = vsub.f32 %v3862_v24, %v3876_v27  ;;  %1666 = vst.msk [vmem:[#allocation2 + $0x18] sm:$0xff] %vm1357_vm2, %v3876_v27  ;;  %1166 = vperm.xlu1 %2554, %v3876_v27   ;;  %2587 = vpow2.f32 %v1119_v33  ;;  %v1135_v24 = vmul.f32 1.442695, %v1110_v60 }
 0x2a1   : > { %v1084_v63 = vpop.xlane.xlu1 %1083  ;;  %v1058_v8 = vpop.xlane.xlu0 %1057  ;;  %2305 = vmatpush3.msra.mxu0 %v455_v26  ;;  %2362 = vmatpush3.msra.mxu1 %v455_v26 }
 0x2a2   : > { %v3893_v56 = vmax.f32 %v3878_v54, %v1084_v63  ;;  %v3896_v38 = vmax.f32 %v3880_v31, %v1058_v8  ;;  %v454_v63 = vld [vmem:[%s3347_s27] sm:$0xff]  ;;  %v994_v8 = vand.u32 2147483647, %v3637_v7 }
 0x2a3   : > { %2306 = vmatprep.subr.mxu0 %v454_v63  ;;  %2347 = vmatprep.subr.mxu1 %v454_v63 }
 0x2a4   : > { %1678 = vst.msk [vmem:[#allocation2 + $0x78] sm:$0xff] %vm1357_vm2, %v3893_v56  ;;  %v1103_v59 = vsub.f32 %v3880_v31, %v3896_v38  ;;  %1665 = vst.msk [vmem:[#allocation2 + $0x10] sm:$0xff] %vm1357_vm2, %v3896_v38  ;;  %1161 = vperm.xlu1 %2554, %v3896_v38   ;;  %2307 = vmatpush3.msra.mxu0 %v454_v63 }
 0x2a5   : > { %v1082_v4 = vpop.xlane.xlu1 %1081  ;;  %v1064_v10 = vpop.xlane.xlu0 %1063  ;;  %2363 = vmatpush3.msra.mxu1 %v454_v63  ;;  %v1000_v63 = vand.u32 2147483647, %v3800_v5 }
 0x2a6   : > { %v3914_v23 = vmax.f32 %v3898_v37, %v1082_v4  ;;  %v3917_v17 = vmax.f32 %v3900_v61, %v1064_v10  ;;  %v995_v4 = vand.u32 2147483647, %v3744_v0 }
 0x2a8   : > { %1677 = vst.msk [vmem:[#allocation2 + $0x70] sm:$0xff] %vm1357_vm2, %v3914_v23  ;;  %1221 = vperm.xlu0 %2553, %v3914_v23   ;;  %v1106_v62 = vsub.f32 %v3900_v61, %v3917_v17  ;;  %1668 = vst.msk [vmem:[#allocation2 + $0x28] sm:$0xff] %vm1357_vm2, %v3917_v17 }
 0x2a9   : > { %v1062_v35 = vpop.xlane.xlu0 %1061 }
 0x2aa   : > { %v1089_v48 = vmax.f32 %v1041_v21, %v1062_v35  ;;  %v3937_v35 = vld [vmem:[#allocation2 + $0x38] sm:$0xff] }
 0x2ac   : > { %1226 = vperm.xlu0 %2553, %v3893_v56   ;;  %v1105_v33 = vsub.f32 %v1041_v21, %v1089_v48  ;;  %1667 = vst.msk [vmem:[#allocation2 + $0x20] sm:$0xff] %vm1357_vm2, %v1089_v48  ;;  %1171 = vperm.xlu1 %2554, %v1089_v48   ;;  %v1109_v21 = vsub.f32 %v3823_v58, %v3830_v34 }
 0x2ad   : > { %v1066_v47 = vpop.xlane.xlu0 %1065  ;;  %v3933_v51 = vpop.eup %2587  ;;  %v1111_v58 = vsub.f32 %v3843_v28, %v3850_v13 }
 0x2ae   : > { %v1125_v1 = vmul.f32 1.442695, %v1105_v33  ;;  %v1091_v10 = vmax.f32 %v1043_v39, %v1066_v47  ;;  %v1010_v33 = vadd.f32 %v995_v4, %v994_v8  ;;  %v1133_v57 = vmul.f32 1.442695, %v1109_v21 }
 0x2af   : > { %v1137_v26 = vmul.f32 1.442695, %v1111_v58  ;;  %v1113_v8 = vsub.f32 %v3860_v11, %v3873_v49  ;;  %v998_v4 = vand.u32 2147483647, %v3796_v41 }
 0x2b0   : > { %1397 = vperm.xlu0 %2553, %v3933_v51   ;;  %2589 = vpow2.f32 %v1125_v1  ;;  %v1107_v48 = vsub.f32 %v1043_v39, %v1091_v10  ;;  %1669 = vst.msk [vmem:[#allocation2 + $0x30] sm:$0xff] %vm1357_vm2, %v1091_v10  ;;  %1196 = vperm.xlu1 %2554, %v3819_v16   ;;  %v1011_v18 = vadd.f32 %v1010_v33, %v996_v20  ;;  %v1002_v20 = vand.u32 2147483647, %v3689_v40 }
 0x2b1   : > { %v1068_v22 = vpop.xlane.xlu0 %1067  ;;  %v1141_v1 = vmul.f32 1.442695, %v1113_v8 }
 0x2b2   : > { %v1129_v47 = vmul.f32 1.442695, %v1107_v48  ;;  %v3946_v12 = vmax.f32 %v3937_v35, %v1068_v22  ;;  %v997_v22 = vand.u32 2147483647, %v3762_v36  ;;  %v1001_v48 = vand.u32 2147483647, %v3803_v32 }
 0x2b4   : > { %2591 = vpow2.f32 %v1129_v47  ;;  %v1108_v39 = vsub.f32 %v3937_v35, %v3946_v12  ;;  %1670 = vst.msk [vmem:[#allocation2 + $0x38] sm:$0xff] %vm1357_vm2, %v3946_v12  ;;  %1191 = vperm.xlu1 %2554, %v3830_v34   ;;  %v1012_v28 = vadd.f32 %v1011_v18, %v997_v22  ;;  %v1004_v22 = vand.u32 2147483647, %v3723_v44 }
 0x2b5   : > { %2593 = vpow2.f32 %v1133_v57  ;;  %v999_v57 = vand.u32 2147483647, %v3787_v43 }
 0x2b6   : > { %2595 = vpow2.f32 %v1137_v26  ;;  %v1013_v34 = vadd.f32 %v1012_v28, %v998_v4  ;;  %v1006_v28 = vand.u32 2147483647, %v3759_v19 }
 0x2b7   : > { %2597 = vpow2.f32 %v1141_v1 }
 0x2b8   : > { %1206 = vperm.xlu1 %2554, %v3839_v9   ;;  %v1014_v49 = vadd.f32 %v1013_v34, %v999_v57  ;;  %v1007_v34 = vand.u32 2147483647, %v3740_v3  ;;  %v1008_v57 = vand.u32 2147483647, %v3784_v42 }
 0x2bc   : > { %1201 = vperm.xlu1 %2554, %v3850_v13   ;;  %v1015_v13 = vadd.f32 %v1014_v49, %v1000_v63 }
 0x2bd   : > { %v3961_v35 = vpop.eup %2589 }
 0x2be   : > { %1412 = vperm.xlu0 %2553, %v3961_v35   ;;  %v1016_v47 = vadd.f32 %v1015_v13, %v1001_v48  ;;  %v1009_v13 = vand.u32 2147483647, %v3772_v25 }
 0x2c0   : > { %1176 = vperm.xlu1 %2554, %v3917_v17   ;;  %v1017_v18 = vadd.f32 %v1016_v47, %v1002_v20  ;;  %v1117_v20 = vmul.f32 1.442695, %v1101_v30  ;;  %v1121_v47 = vmul.f32 1.442695, %v1103_v59 }
 0x2c1   : > { %v3966_v11 = vpop.eup %2591 }
 0x2c2   : > { %1422 = vperm.xlu0 %2553, %v3966_v11   ;;  %v3970_v21 = vpop.eup %2593  ;;  %2599 = vpow2.f32 %v1117_v20 }
 0x2c3   : > { %v3975_v33 = vpop.eup %2595  ;;  %2601 = vpow2.f32 %v1121_v47 }
 0x2c4   : > { %1181 = vperm.xlu1 %2554, %v1091_v10   ;;  %v3979_v58 = vpop.eup %2597  ;;  %v1003_v10 = vand.u32 2147483647, %v3669_v55 }
 0x2c6   : > { %1432 = vperm.xlu0 %2553, %v3970_v21   ;;  %v1018_v26 = vadd.f32 %v1017_v18, %v1003_v10  ;;  %v1123_v18 = vmul.f32 1.442695, %v1104_v46  ;;  %v1127_v10 = vmul.f32 1.442695, %v1106_v62  ;;  %v1139_v46 = vmul.f32 1.442695, %v1112_v6 }
 0x2c8   : > { %1186 = vperm.xlu1 %2554, %v3946_v12   ;;  %v1019_v8 = vadd.f32 %v1018_v26, %v1004_v22  ;;  %v1005_v12 = vand.u32 2147483647, %v3706_v45  ;;  %2603 = vpow2.f32 %v1123_v18  ;;  %v1131_v22 = vmul.f32 1.442695, %v1108_v39 }
 0x2c9   : > { %2605 = vpow2.f32 %v1127_v10 }
 0x2ca   : > { %1442 = vperm.xlu0 %2553, %v3975_v33   ;;  %v1020_v4 = vadd.f32 %v1019_v8, %v1005_v12  ;;  %2607 = vpow2.f32 %v1131_v22 }
 0x2cc   : > { %v1021_v1 = vadd.f32 %v1020_v4, %v1006_v28 }
 0x2ce   : > { %1452 = vperm.xlu0 %2553, %v3979_v58   ;;  %v1022_v49 = vadd.f32 %v1021_v1, %v1007_v34 }
 0x2cf   : > { %v4001_v2 = vpop.eup %2599 }
 0x2d0   : > { %v1023_v63 = vadd.f32 %v1022_v49, %v1008_v57  ;;  %v4008_v27 = vpop.eup %2601 }
 0x2d2   : > { %v1024_v48 = vadd.f32 %v1023_v63, %v1009_v13 }
 0x2d5   : > { %v4014_v38 = vpop.eup %2603 }
 0x2d6   : > { %v4020_v16 = vpop.eup %2605 }
 0x2d7   : > { %v4023_v60 = vpop.eup %2607 }
 0x2ec   : > { %1025 = vadd.xlane.f32.xlu1 %v1024_v48 }
 0x2fb   : > { %v1152_v52 = vpop.permute.xlu0 %1151 }
 0x2fc   : > { %v1229_v30 = vsub.f32 %v3637_v7, %v1152_v52  ;;  %v4396_v7 = vsub.f32 %v3853_v14, %v3858_v50 }
 0x2fd   : > { %1392 = vperm.xlu1 %2554, %v4001_v2  }
 0x2fe   : > { %v1245_v31 = vmul.f32 1.442695, %v1229_v30  ;;  %v1143_v53 = vmul.f32 1.442695, %v4396_v7 }
 0x300   : > { %2609 = vpow2.f32 %v1245_v31 }
 0x301   : > { %1402 = vperm.xlu1 %2554, %v4008_v27   ;;  %2611 = vpow2.f32 %v1135_v24 }
 0x302   : > { %2613 = vpow2.f32 %v1139_v46 }
 0x303   : > { %2615 = vpow2.f32 %v1143_v53 }
 0x305   : > { %1407 = vperm.xlu1 %2554, %v4014_v38  }
 0x309   : > { %1417 = vperm.xlu1 %2554, %v4020_v16  }
 0x30d   : > { %1427 = vperm.xlu1 %2554, %v4023_v60   ;;  %v2610_v15 = vpop.eup %2609 }
 0x30e   : > { %v4026_v9 = vpop.eup %2611  ;;  %2308 = vmatprep.mubr.f32.mxu0 %v2610_v15  ;;  %1309 = vadd.xlane.f32.xlu0 %v2610_v15 }
 0x30f   : > { %v4029_v6 = vpop.eup %2613 }
 0x310   : > { %v4032_v50 = vpop.eup %2615 }
 0x311   : > { %1437 = vperm.xlu1 %2554, %v4026_v9  }
 0x315   : > { %1447 = vperm.xlu1 %2554, %v4029_v6  }
 0x317   : > { %v1157_v14 = vpop.permute.xlu1 %1156  ;;  %v1217_v1 = vpop.permute.xlu0 %1216 }
 0x318   : > { %v1230_v61 = vsub.f32 %v3744_v0, %v1157_v14  ;;  %v1242_v31 = vsub.f32 %v3740_v3, %v1217_v1 }
 0x319   : > { %1457 = vperm.xlu1 %2554, %v4032_v50  }
 0x31a   : > { %v1247_v59 = vmul.f32 1.442695, %v1230_v61 }
 0x31b   : > { %v1167_v17 = vpop.permute.xlu1 %1166  ;;  %v1212_v63 = vpop.permute.xlu0 %1211 }
 0x31c   : > { %2617 = vpow2.f32 %v1247_v59  ;;  %v1232_v62 = vsub.f32 %v3762_v36, %v1167_v17  ;;  %v1241_v22 = vsub.f32 %v3759_v19, %v1212_v63  ;;  %v1271_v19 = vmul.f32 1.442695, %v1242_v31 }
 0x31e   : > { %v1251_v39 = vmul.f32 1.442695, %v1232_v62  ;;  %v1269_v7 = vmul.f32 1.442695, %v1241_v22 }
 0x31f   : > { %v1162_v26 = vpop.permute.xlu1 %1161 }
 0x320   : > { %2619 = vpow2.f32 %v1251_v39  ;;  %v1231_v8 = vsub.f32 %v3775_v29, %v1162_v26 }
 0x322   : > { %v1249_v12 = vmul.f32 1.442695, %v1231_v8 }
 0x324   : > { %2621 = vpow2.f32 %v1249_v12 }
 0x327   : > { %v1172_v28 = vpop.permute.xlu1 %1171 }
 0x328   : > { %v1233_v4 = vsub.f32 %v3796_v41, %v1172_v28  ;;  %v1222_v41 = vpop.permute.xlu0 %1221 }
 0x329   : > { %v2618_v34 = vpop.eup %2617 }
 0x32a   : > { %v1253_v0 = vmul.f32 1.442695, %v1233_v4  ;;  %1311 = vadd.xlane.f32.xlu0 %v2618_v34  ;;  %2309 = vmatmul.mubr.f32.vlgmr.msra.gmra.mxu0 %v2618_v34 }
 0x32b   : > { %v1197_v57 = vpop.permute.xlu1 %1196 }
 0x32c   : > { %2623 = vpow2.f32 %v1253_v0  ;;  %v1238_v36 = vsub.f32 %v3669_v55, %v1197_v57  ;;  %v1243_v55 = vsub.f32 %v3784_v42, %v1222_v41  ;;  %v1227_v24 = vpop.permute.xlu0 %1226  ;;  %v4397_v57 = vsub.f32 %v3878_v54, %v3893_v56 }
 0x32d   : > { %v2620_v49 = vpop.eup %2619  ;;  %v1244_v61 = vsub.f32 %v3772_v25, %v1227_v24 }
 0x32e   : > { %1315 = vadd.xlane.f32.xlu0 %v2620_v49  ;;  %v1263_v20 = vmul.f32 1.442695, %v1238_v36  ;;  %v1273_v14 = vmul.f32 1.442695, %v1243_v55  ;;  %v4398_v36 = vsub.f32 %v3898_v37, %v3914_v23 }
 0x32f   : > { %v1192_v13 = vpop.permute.xlu1 %1191  ;;  %v1275_v59 = vmul.f32 1.442695, %v1244_v61 }
 0x330   : > { %v1237_v29 = vsub.f32 %v3689_v40, %v1192_v13  ;;  %v1145_v63 = vmul.f32 1.442695, %v4398_v36 }
 0x331   : > { %v2622_v48 = vpop.eup %2621 }
 0x332   : > { %v1261_v47 = vmul.f32 1.442695, %v1237_v29  ;;  %2311 = vmatprep.mubr.f32.mxu0 %v2622_v48 }
 0x333   : > { %2312 = vmatmul.mubr.f32.gmra.mxu0 %v2620_v49  ;;  %v1207_v18 = vpop.permute.xlu1 %1206  ;;  %v1147_v49 = vmul.f32 1.442695, %v4397_v57  ;;  %v1283_v57 = vld [vmem:[#allocation3 + $0x30] sm:$0xff] }
 0x334   : > { %2625 = vpow2.f32 %v1261_v47  ;;  %v1240_v10 = vsub.f32 %v3706_v45, %v1207_v18 }
 0x335   : > { %2627 = vpow2.f32 %v1263_v20  ;;  %v4059_v20 = vpop.permute.xlu0 %1397 }
 0x336   : > { %v1267_v46 = vmul.f32 1.442695, %v1240_v10 }
 0x337   : > { %v1202_v52 = vpop.permute.xlu1 %1201 }
 0x338   : > { %v1239_v30 = vsub.f32 %v3723_v44, %v1202_v52 }
 0x339   : > { %v2624_v40 = vpop.eup %2623  ;;  %v4064_v18 = vpop.permute.xlu0 %1412 }
 0x33a   : > { %v1265_v53 = vmul.f32 1.442695, %v1239_v30  ;;  %2314 = vmatprep.mubr.f32.mxu0 %v2624_v40  ;;  %v1277_v30 = vld [vmem:[#allocation3] sm:$0xff] }
 0x33b   : > { %v1177_v15 = vpop.permute.xlu1 %1176 }
 0x33c   : > { %2629 = vpow2.f32 %v1265_v53  ;;  %v1234_v45 = vsub.f32 %v3787_v43, %v1177_v15 }
 0x33d   : > { %2631 = vpow2.f32 %v1267_v46  ;;  %1313 = vadd.xlane.f32.xlu1 %v2622_v48  ;;  %v4066_v10 = vpop.permute.xlu0 %1422 }
 0x33e   : > { %2633 = vpow2.f32 %v1269_v7  ;;  %v1255_v44 = vmul.f32 1.442695, %v1234_v45 }
 0x33f   : > { %2635 = vpow2.f32 %v1273_v14  ;;  %v1182_v42 = vpop.permute.xlu1 %1181  ;;  %v1278_v14 = vld [vmem:[#allocation3 + $0x8] sm:$0xff] }
 0x340   : > { %2637 = vpow2.f32 %v1255_v44  ;;  %v1235_v3 = vsub.f32 %v3800_v5, %v1182_v42  ;;  %v1294_v45 = vmul.f32 %v3933_v51, %v1278_v14 }
 0x341   : > { %v2626_v17 = vpop.eup %2625  ;;  %2639 = vpow2.f32 %v1271_v19  ;;  %1317 = vadd.xlane.f32.xlu1 %v2624_v40  ;;  %v4068_v22 = vpop.permute.xlu0 %1432  ;;  %v1293_v40 = vmul.f32 %v4001_v2, %v1277_v30  ;;  %v993_v19 = vld [vmem:[%s3353_s25] sm:$0x1]  ;;  %v1280_v2 = vld [vmem:[#allocation3 + $0x18] sm:$0xff] }
 0x342   : > { %v2628_v62 = vpop.eup %2627  ;;  %v1257_v39 = vmul.f32 1.442695, %v1235_v3  ;;  %2320 = vmatprep.mubr.f32.mxu1 %v2626_v17  ;;  %2641 = vpow2.f32 %v1275_v59 }
 0x343   : > { %2321 = vmatmul.mubr.f32.vlgmr.msra.gmra.mxu1 %v2628_v62  ;;  %v1187_v25 = vpop.permute.xlu1 %1186 }
 0x344   : > { %2643 = vpow2.f32 %v1257_v39  ;;  %v1236_v43 = vsub.f32 %v3803_v32, %v1187_v25 }
 0x345   : > { %v4070_v52 = vpop.permute.xlu0 %1442 }
 0x346   : > { %v1259_v26 = vmul.f32 1.442695, %v1236_v43 }
 0x348   : > { %2645 = vpow2.f32 %v1259_v26  ;;  %v1279_v26 = vld [vmem:[#allocation3 + $0x10] sm:$0xff] }
 0x349   : > { %v2630_v8 = vpop.eup %2629  ;;  %2647 = vpow2.f32 %v1147_v49  ;;  %v4072_v55 = vpop.permute.xlu0 %1452 }
 0x34a   : > { %v2632_v12 = vpop.eup %2631  ;;  %2323 = vmatprep.mubr.f32.mxu1 %v2630_v8  ;;  %2649 = vpow2.f32 %v1145_v63  ;;  %v1284_v63 = vld [vmem:[#allocation3 + $0x38] sm:$0xff] }
 0x34b   : > { %v2634_v28 = vpop.eup %2633  ;;  %2324 = vmatmul.mubr.f32.gmra.mxu1 %v2632_v12 }
 0x34c   : > { %v2636_v5 = vpop.eup %2635  ;;  %2326 = vmatprep.mubr.f32.mxu1 %v2634_v28 }
 0x34d   : > { %v2638_v4 = vpop.eup %2637 }
 0x34e   : > { %v2640_v1 = vpop.eup %2639  ;;  %1319 = vadd.xlane.f32.xlu0 %v2638_v4  ;;  %2315 = vmatmul.mubr.f32.gmra.mxu0 %v2638_v4 }
 0x34f   : > { %2327 = vmatmul.mubr.f32.gmra.mxu1 %v2640_v1  ;;  %v2642_v34 = vpop.eup %2641 }
 0x350   : > { %2329 = vmatprep.mubr.f32.mxu1 %v2636_v5 }
 0x351   : > { %v2644_v0 = vpop.eup %2643 }
 0x352   : > { %2317 = vmatprep.mubr.f32.mxu0 %v2644_v0  ;;  %1321 = vadd.xlane.f32.xlu1 %v2644_v0 }
 0x353   : > { %2330 = vmatmul.mubr.f32.gmra.mxu1 %v2642_v34 }
 0x355   : > { %v2646_v32 = vpop.eup %2645 }
 0x356   : > { %1323 = vadd.xlane.f32.xlu0 %v2646_v32  ;;  %2318 = vmatmul.mubr.f32.gmra.mxu0 %v2646_v32  ;;  %v4056_v13 = vpop.eup %2647 }
 0x357   : > { %1325 = vadd.xlane.f32.xlu1 %v2626_v17  ;;  %v4061_v56 = vpop.eup %2649 }
 0x35a   : > { %1327 = vadd.xlane.f32.xlu0 %v2628_v62  ;;  %v1296_v62 = vmul.f32 %v4014_v38, %v1280_v2 }
 0x35b   : > { %1329 = vadd.xlane.f32.xlu1 %v2630_v8  ;;  %v1295_v8 = vmul.f32 %v4008_v27, %v1279_v26  ;;  %v1299_v27 = vmul.f32 %v3966_v11, %v1283_v57  ;;  %v1376_v57 = vld [vmem:[#allocation4 + $0x58] sm:$0xff] }
 0x35e   : > { %1331 = vadd.xlane.f32.xlu0 %v2632_v12 }
 0x35f   : > { %1333 = vadd.xlane.f32.xlu1 %v2634_v28  ;;  %v1281_v28 = vld [vmem:[#allocation3 + $0x20] sm:$0xff] }
 0x360   : > { %v1297_v4 = vmul.f32 %v3961_v35, %v1281_v28  ;;  %v1300_v35 = vmul.f32 %v4023_v60, %v1284_v63 }
 0x362   : > { %1335 = vadd.xlane.f32.xlu0 %v2640_v1 }
 0x363   : > { %1337 = vadd.xlane.f32.xlu1 %v2636_v5 }
 0x366   : > { %1339 = vadd.xlane.f32.xlu0 %v2642_v34  ;;  %v1282_v34 = vld [vmem:[#allocation3 + $0x28] sm:$0xff] }
 0x367   : > { %v1298_v0 = vmul.f32 %v4020_v16, %v1282_v34 }
 0x374   : > { %1467 = vperm.xlu1 %2554, %v4056_v13  }
 0x375   : > { %v1026_v29 = vpop.xlane.xlu1 %1025 }
 0x376   : > { %v1027_v48 = vrot.slane %v1026_v29, 4 }
 0x378   : > { %v1028_v47 = vadd.f32 %v1027_v48, %v1026_v29  ;;  %v1285_v48 = vld [vmem:[#allocation3 + $0x40] sm:$0xff] }
 0x379   : > { %v4074_v24 = vpop.permute.xlu1 %1392 }
 0x37a   : > { %v1029_v54 = vrot.slane %v1028_v47, 2 }
 0x37c   : > { %1462 = vperm.xlu0 %2553, %v4061_v56   ;;  %v1030_v41 = vadd.f32 %v1029_v54, %v1028_v47  ;;  %v1301_v54 = vmul.f32 %v3970_v21, %v1285_v48  ;;  %v1375_v21 = vld [vmem:[#allocation4] sm:$0xff] }
 0x37d   : > { %v4078_v7 = vpop.permute.xlu1 %1402  ;;  %v1382_v48 = vld [vmem:[#allocation4 + $0x40] sm:$0xff] }
 0x37e   : > { %v1031_v37 = vrot.slane %v1030_v41, 1 }
 0x380   : > { %v1032_v23 = vadd.f32 %v1031_v37, %v1030_v41  ;;  %v1286_v41 = vld [vmem:[#allocation3 + $0x48] sm:$0xff] }
 0x381   : > { %v4080_v53 = vpop.permute.xlu1 %1407  ;;  %v1302_v11 = vmul.f32 %v4026_v9, %v1286_v41 }
 0x382   : > { %2364 = vpush %v1032_v23  ;;  %v1287_v23 = vld [vmem:[#allocation3 + $0x50] sm:$0xff] }
 0x385   : > { %v4082_v15 = vpop.permute.xlu1 %1417 }
 0x389   : > { %v4084_v61 = vpop.permute.xlu1 %1427 }
 0x38d   : > { %v4088_v17 = vpop.permute.xlu1 %1437 }
 0x391   : > { %v4094_v43 = vpop.permute.xlu1 %1447 }
 0x395   : > { %v4096_v51 = vpop.permute.xlu1 %1457 }
 0x397   : > { %v1310_v31 = vpop.xlane.xlu0 %1309 }
 0x398   : > { %v1341_v46 = vadd.f32 %v1310_v31, %v1293_v40  ;;  %v1303_v31 = vmul.f32 %v3975_v33, %v1287_v23  ;;  %v1291_v33 = vld [vmem:[#allocation3 + $0x70] sm:$0xff] }
 0x399   : > { %v1384_v23 = vld [vmem:[#allocation4 + $0x10] sm:$0xff] }
 0x39a   : > { %1358 = vst.msk [vmem:[#allocation3] sm:$0xff] %vm1357_vm2, %v1341_v46  ;;  %v1288_v46 = vld [vmem:[#allocation3 + $0x58] sm:$0xff] }
 0x3b3   : > { %v1312_v44 = vpop.xlane.xlu0 %1311  ;;  %s2365_s21 = spop %2364 }
 0x3b4   : > { %v1342_v42 = vadd.f32 %v1312_v44, %v1294_v45  ;;  %v1034_v59 = vstv %s2365_s21  ;;  %v1289_v45 = vld [vmem:[#allocation3 + $0x60] sm:$0xff]  ;;  %v1304_v44 = vmul.f32 %v4029_v6, %v1288_v46  ;;  %v1480_v46 = vmul.f32 %v4070_v52, %v1384_v23 }
 0x3b5   : > { %v1035_v3 = vadd.f32 %v1034_v59, %v993_v19  ;;  %v1305_v9 = vmul.f32 %v3979_v58, %v1289_v45  ;;  %v1374_v59 = vld [vmem:[#allocation4 + $0x30] sm:$0xff]  ;;  %v1307_v58 = vmul.f32 %v4061_v56, %v1291_v33 }
 0x3b6   : > { %1359 = vst.msk [vmem:[#allocation3 + $0x8] sm:$0xff] %vm1357_vm2, %v1342_v42  ;;  %v1290_v42 = vld [vmem:[#allocation3 + $0x68] sm:$0xff]  ;;  %v1470_v6 = vmul.f32 %v4074_v24, %v1374_v59 }
 0x3b7   : > { %1036 = vst [vmem:[%s3353_s25] sm:$0x1] %v1035_v3  ;;  %v1316_v39 = vpop.xlane.xlu0 %1315 }
 0x3b8   : > { %v1344_v25 = vadd.f32 %v1316_v39, %v1296_v62  ;;  %v1471_v39 = vmul.f32 %v4059_v20, %v1375_v21 }
 0x3ba   : > { %1361 = vst.msk [vmem:[#allocation3 + $0x18] sm:$0xff] %vm1357_vm2, %v1344_v25 }
 0x3c6   : > { %v1314_v12 = vpop.xlane.xlu1 %1313 }
 0x3c7   : > { %v1343_v5 = vadd.f32 %v1314_v12, %v1295_v8  ;;  %v1306_v8 = vmul.f32 %v4032_v50, %v1290_v42  ;;  %v1377_v50 = vld [vmem:[#allocation4 + $0x18] sm:$0xff] }
 0x3c8   : > { %v1473_v56 = vmul.f32 %v4080_v53, %v1377_v50 }
 0x3c9   : > { %1360 = vst.msk [vmem:[#allocation3 + $0x10] sm:$0xff] %vm1357_vm2, %v1343_v5  ;;  %v1292_v5 = vld [vmem:[#allocation3 + $0x78] sm:$0xff] }
 0x3ca   : > { %v1318_v38 = vpop.xlane.xlu1 %1317 }
 0x3cb   : > { %v1345_v1 = vadd.f32 %v1318_v38, %v1297_v4 }
 0x3cd   : > { %1362 = vst.msk [vmem:[#allocation3 + $0x20] sm:$0xff] %vm1357_vm2, %v1345_v1 }
 0x3d7   : > { %v1320_v32 = vpop.xlane.xlu0 %1319 }
 0x3d8   : > { %v1346_v49 = vadd.f32 %v1320_v32, %v1298_v0  ;;  %v1308_v0 = vmul.f32 %v4056_v13, %v1292_v5  ;;  %v1383_v13 = vld [vmem:[#allocation4 + $0x20] sm:$0xff] }
 0x3da   : > { %1363 = vst.msk [vmem:[#allocation3 + $0x28] sm:$0xff] %vm1357_vm2, %v1346_v49 }
 0x3db   : > { %v1322_v36 = vpop.xlane.xlu1 %1321 }
 0x3dc   : > { %v1347_v29 = vadd.f32 %v1322_v36, %v1299_v27  ;;  %v1472_v27 = vmul.f32 %v4078_v7, %v1376_v57  ;;  %v1379_v7 = vld [vmem:[#allocation4 + $0x68] sm:$0xff] }
 0x3de   : > { %1364 = vst.msk [vmem:[#allocation3 + $0x30] sm:$0xff] %vm1357_vm2, %v1347_v29 }
 0x3df   : > { %v1324_v47 = vpop.xlane.xlu0 %1323 }
 0x3e0   : > { %v1348_v16 = vadd.f32 %v1324_v47, %v1300_v35  ;;  %v1326_v37 = vpop.xlane.xlu1 %1325  ;;  %v1479_v35 = vmul.f32 %v4088_v17, %v1383_v13  ;;  %v1386_v17 = vld [vmem:[#allocation4 + $0x60] sm:$0xff] }
 0x3e1   : > { %v1349_v30 = vadd.f32 %v1326_v37, %v1301_v54  ;;  %v1478_v54 = vmul.f32 %v4068_v22, %v1382_v48  ;;  %v1385_v37 = vld [vmem:[#allocation4 + $0x38] sm:$0xff]  ;;  %v1482_v59 = vmul.f32 %v4072_v55, %v1386_v17 }
 0x3e2   : > { %1365 = vst.msk [vmem:[#allocation3 + $0x38] sm:$0xff] %vm1357_vm2, %v1348_v16 }
 0x3e3   : > { %1366 = vst.msk [vmem:[#allocation3 + $0x40] sm:$0xff] %vm1357_vm2, %v1349_v30  ;;  %v1328_v40 = vpop.xlane.xlu0 %1327  ;;  %v1481_v30 = vmul.f32 %v4094_v43, %v1385_v37 }
 0x3e4   : > { %v1350_v14 = vadd.f32 %v1328_v40, %v1302_v11  ;;  %v1330_v60 = vpop.xlane.xlu1 %1329  ;;  %v1387_v11 = vld [vmem:[#allocation4 + $0x70] sm:$0xff] }
 0x3e5   : > { %v1351_v19 = vadd.f32 %v1330_v60, %v1303_v31  ;;  %v1378_v31 = vld [vmem:[#allocation4 + $0x50] sm:$0xff]  ;;  %v1475_v60 = vmul.f32 %v4082_v15, %v1379_v7  ;;  %v1483_v45 = vmul.f32 %v4096_v51, %v1387_v11  ;;  %v1381_v51 = vld [vmem:[#allocation4 + $0x48] sm:$0xff] }
 0x3e6   : > { %1367 = vst.msk [vmem:[#allocation3 + $0x48] sm:$0xff] %vm1357_vm2, %v1350_v14  ;;  %v1477_v55 = vmul.f32 %v4084_v61, %v1381_v51 }
 0x3e7   : > { %1368 = vst.msk [vmem:[#allocation3 + $0x50] sm:$0xff] %vm1357_vm2, %v1351_v19  ;;  %v1332_v2 = vpop.xlane.xlu0 %1331 }
 0x3e8   : > { %v1352_v3 = vadd.f32 %v1332_v2, %v1304_v44  ;;  %v1334_v62 = vpop.xlane.xlu1 %1333  ;;  %v1474_v44 = vmul.f32 %v4064_v18, %v1378_v31  ;;  %v1389_v2 = vld [vmem:[#allocation4 + $0x28] sm:$0xff] }
 0x3e9   : > { %v1353_v25 = vadd.f32 %v1334_v62, %v1305_v9  ;;  %v1388_v62 = vld [vmem:[#allocation4 + $0x78] sm:$0xff] }
 0x3ea   : > { %1369 = vst.msk [vmem:[#allocation3 + $0x58] sm:$0xff] %vm1357_vm2, %v1352_v3  ;;  %v2310_v26 = vpop.f32.mrf.mxu0 }
 0x3eb   : > { %1370 = vst.msk [vmem:[#allocation3 + $0x60] sm:$0xff] %vm1357_vm2, %v1353_v25  ;;  %v1632_v12 = vadd.f32 %v2310_v26, %v1471_v39  ;;  %v1336_v28 = vpop.xlane.xlu0 %1335 }
 0x3ec   : > { %v1354_v4 = vadd.f32 %v1336_v28, %v1306_v8  ;;  %v1338_v38 = vpop.xlane.xlu1 %1337  ;;  %v1552_v1 = vpop.f32.mrf.mxu0  ;;  %v1380_v8 = vld [vmem:[#allocation4 + $0x8] sm:$0xff] }
 0x3ed   : > { %1648 = vst [vmem:[#allocation4] sm:$0xff] %v1632_v12  ;;  %v1355_v20 = vadd.f32 %v1338_v38, %v1307_v58  ;;  %v1631_v34 = vadd.f32 %v1552_v1, %v1470_v6 }
 0x3ee   : > { %1371 = vst.msk [vmem:[#allocation3 + $0x68] sm:$0xff] %vm1357_vm2, %v1354_v4  ;;  %v1476_v4 = vmul.f32 %v4066_v10, %v1380_v8 }
 0x3ef   : > { %1372 = vst.msk [vmem:[#allocation3 + $0x70] sm:$0xff] %vm1357_vm2, %v1355_v20  ;;  %1647 = vst [vmem:[#allocation4 + $0x30] sm:$0xff] %v1631_v34  ;;  %v1340_v24 = vpop.xlane.xlu0 %1339 }
 0x3f0   : > { %v1356_v32 = vadd.f32 %v1340_v24, %v1308_v0  ;;  %v1468_v9 = vpop.permute.xlu1 %1467 }
 0x3f1   : > { %v1485_v25 = vmul.f32 %v1468_v9, %v1389_v2 }
 0x3f2   : > { %1373 = vst.msk [vmem:[#allocation3 + $0x78] sm:$0xff] %vm1357_vm2, %v1356_v32 }
 0x3f3   : > { %v2313_v49 = vpop.f32.mrf.mxu0 }
 0x3f4   : > { %v1634_v36 = vadd.f32 %v2313_v49, %v1473_v56 }
 0x3f5   : > { %v1562_v63 = vpop.f32.mrf.mxu0 }
 0x3f6   : > { %1650 = vst [vmem:[#allocation4 + $0x18] sm:$0xff] %v1634_v36  ;;  %v1633_v29 = vadd.f32 %v1562_v63, %v1472_v27 }
 0x3f7   : > { %v1463_v33 = vpop.permute.xlu0 %1462 }
 0x3f8   : > { %1649 = vst [vmem:[#allocation4 + $0x58] sm:$0xff] %v1633_v29  ;;  %v1484_v6 = vmul.f32 %v1463_v33, %v1388_v62 }
 0x403   : > { %v2322_v47 = vpop.f32.mrf.mxu1 }
 0x404   : > { %v1640_v41 = vadd.f32 %v2322_v47, %v1479_v35 }
 0x405   : > { %v1592_v16 = vpop.f32.mrf.mxu1 }
 0x406   : > { %1656 = vst [vmem:[#allocation4 + $0x20] sm:$0xff] %v1640_v41  ;;  %v1639_v53 = vadd.f32 %v1592_v16, %v1478_v54 }
 0x408   : > { %1655 = vst [vmem:[#allocation4 + $0x40] sm:$0xff] %v1639_v53 }
 0x40b   : > { %v2325_v40 = vpop.f32.mrf.mxu1 }
 0x40c   : > { %v1642_v14 = vadd.f32 %v2325_v40, %v1481_v30 }
 0x40d   : > { %v1602_v22 = vpop.f32.mrf.mxu1 }
 0x40e   : > { %1658 = vst [vmem:[#allocation4 + $0x38] sm:$0xff] %v1642_v14  ;;  %v1641_v19 = vadd.f32 %v1602_v22, %v1480_v46  ;;  %v2316_v21 = vpop.f32.mrf.mxu0 }
 0x40f   : > { %v1636_v43 = vadd.f32 %v2316_v21, %v1475_v60  ;;  %v2328_v42 = vpop.f32.mrf.mxu1 }
 0x410   : > { %1657 = vst [vmem:[#allocation4 + $0x10] sm:$0xff] %v1641_v19  ;;  %v1644_v52 = vadd.f32 %v2328_v42, %v1483_v45  ;;  %v1572_v3 = vpop.f32.mrf.mxu0 }
 0x411   : > { %1652 = vst [vmem:[#allocation4 + $0x68] sm:$0xff] %v1636_v43  ;;  %v1635_v15 = vadd.f32 %v1572_v3, %v1474_v44  ;;  %v1612_v39 = vpop.f32.mrf.mxu1 }
 0x412   : > { %1660 = vst [vmem:[#allocation4 + $0x70] sm:$0xff] %v1644_v52  ;;  %v1643_v26 = vadd.f32 %v1612_v39, %v1482_v59 }
 0x413   : > { %1651 = vst [vmem:[#allocation4 + $0x50] sm:$0xff] %v1635_v15  ;;  %v2331_v18 = vpop.f32.mrf.mxu1 }
 0x414   : > { %1659 = vst [vmem:[#allocation4 + $0x60] sm:$0xff] %v1643_v26  ;;  %v1646_v12 = vadd.f32 %v2331_v18, %v1485_v25 }
 0x415   : > { %v1622_v28 = vpop.f32.mrf.mxu1 }
 0x416   : > { %1662 = vst [vmem:[#allocation4 + $0x28] sm:$0xff] %v1646_v12  ;;  %v1645_v58 = vadd.f32 %v1622_v28, %v1484_v6  ;;  %v2319_v5 = vpop.f32.mrf.mxu0 }
 0x417   : > { %v1638_v38 = vadd.f32 %v2319_v5, %v1477_v55  ;;  %1682 = sbr.rel (%p2090_p11) target bundleno = 1223 (0x4c7), region = 56 }
 0x418   : > { %1661 = vst [vmem:[#allocation4 + $0x78] sm:$0xff] %v1645_v58  ;;  %v1582_v1 = vpop.f32.mrf.mxu0 }
 0x419   : > { %1654 = vst [vmem:[#allocation4 + $0x48] sm:$0xff] %v1638_v38  ;;  %v1637_v20 = vadd.f32 %v1582_v1, %v1476_v4 }
 0x41b   : > { %1653 = vst [vmem:[#allocation4 + $0x8] sm:$0xff] %v1637_v20 }
 0x41c   : > { %v1685_v34 = vld [vmem:[#allocation3 + $0x10] sm:$0xff]  ;;  %v1683_v0 = vld [vmem:[#allocation3] sm:$0xff]  ;;  %v1686_v50 = vld [vmem:[#allocation3 + $0x18] sm:$0xff]  ;;  %v2994_v24 = vmov 0  }
 0x41d   : > { %2652 = vset.pattern.permute.xlu1 %v2994_v24  ;;  %2651 = vset.pattern.permute.xlu0 %v2994_v24  ;;  %2653 = vrcp.f32 %v1685_v34  ;;  %v1684_v61 = vld [vmem:[#allocation3 + $0x8] sm:$0xff]  ;;  %v1687_v32 = vld [vmem:[#allocation3 + $0x20] sm:$0xff]  ;;  %v1690_v57 = vld [vmem:[#allocation3 + $0x38] sm:$0xff] }
 0x41e   : > { %2655 = vrcp.f32 %v1683_v0  ;;  %v1688_v10 = vld [vmem:[#allocation3 + $0x28] sm:$0xff]  ;;  %v1689_v56 = vld [vmem:[#allocation3 + $0x30] sm:$0xff]  ;;  %v1691_v27 = vld [vmem:[#allocation3 + $0x40] sm:$0xff] }
 0x41f   : > { %2657 = vrcp.f32 %v1686_v50  ;;  %v1692_v49 = vld [vmem:[#allocation3 + $0x48] sm:$0xff]  ;;  %v1694_v13 = vld [vmem:[#allocation3 + $0x58] sm:$0xff]  ;;  %v1693_v35 = vld [vmem:[#allocation3 + $0x50] sm:$0xff] }
 0x420   : > { %2659 = vrcp.f32 %v1684_v61  ;;  %v1696_v54 = vld [vmem:[#allocation3 + $0x68] sm:$0xff]  ;;  %v1695_v16 = vld [vmem:[#allocation3 + $0x60] sm:$0xff]  ;;  %v1698_v37 = vld [vmem:[#allocation3 + $0x78] sm:$0xff] }
 0x421   : > { %2661 = vrcp.f32 %v1688_v10  ;;  %v1697_v7 = vld [vmem:[#allocation3 + $0x70] sm:$0xff]  ;;  %v1717_v22 = vld [vmem:[#allocation4 + $0x58] sm:$0xff]  ;;  %v1716_v43 = vld [vmem:[#allocation4] sm:$0xff] }
 0x422   : > { %2663 = vrcp.f32 %v1687_v32  ;;  %v1715_v45 = vld [vmem:[#allocation4 + $0x30] sm:$0xff]  ;;  %v1718_v9 = vld [vmem:[#allocation4 + $0x18] sm:$0xff]  ;;  %v1720_v62 = vld [vmem:[#allocation4 + $0x68] sm:$0xff] }
 0x423   : > { %2665 = vrcp.f32 %v1690_v57  ;;  %v1719_v33 = vld [vmem:[#allocation4 + $0x50] sm:$0xff]  ;;  %v1722_v26 = vld [vmem:[#allocation4 + $0x48] sm:$0xff]  ;;  %v1724_v28 = vld [vmem:[#allocation4 + $0x20] sm:$0xff] }
 0x424   : > { %2667 = vrcp.f32 %v1689_v56  ;;  %v1721_v18 = vld [vmem:[#allocation4 + $0x8] sm:$0xff]  ;;  %v1723_v58 = vld [vmem:[#allocation4 + $0x40] sm:$0xff]  ;;  %v1726_v20 = vld [vmem:[#allocation4 + $0x38] sm:$0xff] }
 0x425   : > { %2669 = vrcp.f32 %v1692_v49  ;;  %v1725_v34 = vld [vmem:[#allocation4 + $0x10] sm:$0xff]  ;;  %v1727_v32 = vld [vmem:[#allocation4 + $0x60] sm:$0xff] }
 0x426   : > { %2671 = vrcp.f32 %v1691_v27  ;;  %v1728_v10 = vld [vmem:[#allocation4 + $0x70] sm:$0xff] }
 0x427   : > { %2673 = vrcp.f32 %v1694_v13 }
 0x428   : > { %2675 = vrcp.f32 %v1693_v35 }
 0x429   : > { %2677 = vrcp.f32 %v1696_v54 }
 0x42a   : > { %v2654_v36 = vpop.eup %2653  ;;  %2679 = vrcp.f32 %v1695_v16 }
 0x42b   : > { %v2656_v63 = vpop.eup %2655  ;;  %1743 = vperm.xlu1 %2652, %v2654_v36   ;;  %2681 = vrcp.f32 %v1698_v37  ;;  %v1730_v36 = vld [vmem:[#allocation4 + $0x28] sm:$0xff] }
 0x42c   : > { %v2658_v29 = vpop.eup %2657  ;;  %1733 = vperm.xlu0 %2651, %v2656_v63   ;;  %2683 = vrcp.f32 %v1697_v7  ;;  %v1729_v63 = vld [vmem:[#allocation4 + $0x78] sm:$0xff] }
 0x42d   : > { %v2660_v48 = vpop.eup %2659 }
 0x42e   : > { %v2662_v47 = vpop.eup %2661 }
 0x42f   : > { %1748 = vperm.xlu1 %2652, %v2658_v29   ;;  %v2664_v41 = vpop.eup %2663 }
 0x430   : > { %1738 = vperm.xlu0 %2651, %v2660_v48   ;;  %v2666_v53 = vpop.eup %2665 }
 0x431   : > { %v2668_v23 = vpop.eup %2667 }
 0x432   : > { %v2670_v30 = vpop.eup %2669 }
 0x433   : > { %1758 = vperm.xlu1 %2652, %v2662_v47   ;;  %v2672_v11 = vpop.eup %2671 }
 0x434   : > { %1753 = vperm.xlu0 %2651, %v2664_v41   ;;  %v2674_v40 = vpop.eup %2673 }
 0x435   : > { %v2676_v31 = vpop.eup %2675 }
 0x436   : > { %v2678_v46 = vpop.eup %2677 }
 0x437   : > { %1768 = vperm.xlu1 %2652, %v2666_v53   ;;  %v2680_v14 = vpop.eup %2679 }
 0x438   : > { %1763 = vperm.xlu0 %2651, %v2668_v23   ;;  %v2682_v17 = vpop.eup %2681 }
 0x439   : > { %v2684_v60 = vpop.eup %2683 }
 0x43b   : > { %1778 = vperm.xlu1 %2652, %v2670_v30  }
 0x43c   : > { %1773 = vperm.xlu0 %2651, %v2672_v11  }
 0x43f   : > { %1788 = vperm.xlu1 %2652, %v2674_v40  }
 0x440   : > { %1783 = vperm.xlu0 %2651, %v2676_v31  }
 0x443   : > { %1798 = vperm.xlu1 %2652, %v2678_v46  }
 0x444   : > { %1793 = vperm.xlu0 %2651, %v2680_v14  }
 0x447   : > { %1808 = vperm.xlu1 %2652, %v2682_v17  }
 0x448   : > { %1803 = vperm.xlu0 %2651, %v2684_v60  }
 0x4a6   : > { %v1744_v19 = vpop.permute.xlu1 %1743 }
 0x4a7   : > { %v1813_v21 = vmul.f32 %v1744_v19, %v1717_v22  ;;  %v1734_v44 = vpop.permute.xlu0 %1733 }
 0x4a8   : > { %v1811_v2 = vmul.f32 %v1734_v44, %v1715_v45 }
 0x4a9   : > { %1829 = vst [vmem:[%s3349_s12 + $0x10] sm:$0xff] %v1813_v21 }
 0x4aa   : > { %1827 = vst [vmem:[%s3349_s12] sm:$0xff] %v1811_v2  ;;  %v1749_v42 = vpop.permute.xlu1 %1748 }
 0x4ab   : > { %v1814_v59 = vmul.f32 %v1749_v42, %v1718_v9  ;;  %v1739_v52 = vpop.permute.xlu0 %1738 }
 0x4ac   : > { %v1812_v3 = vmul.f32 %v1739_v52, %v1716_v43 }
 0x4ad   : > { %1830 = vst [vmem:[%s3349_s12 + $0x18] sm:$0xff] %v1814_v59 }
 0x4ae   : > { %1828 = vst [vmem:[%s3349_s12 + $0x8] sm:$0xff] %v1812_v3  ;;  %v1759_v15 = vpop.permute.xlu1 %1758 }
 0x4af   : > { %v1816_v39 = vmul.f32 %v1759_v15, %v1720_v62  ;;  %v1754_v51 = vpop.permute.xlu0 %1753 }
 0x4b0   : > { %v1815_v25 = vmul.f32 %v1754_v51, %v1719_v33 }
 0x4b1   : > { %1832 = vst [vmem:[%s3349_s12 + $0x28] sm:$0xff] %v1816_v39 }
 0x4b2   : > { %1831 = vst [vmem:[%s3349_s12 + $0x20] sm:$0xff] %v1815_v25  ;;  %v1769_v8 = vpop.permute.xlu1 %1768 }
 0x4b3   : > { %v1818_v6 = vmul.f32 %v1769_v8, %v1722_v26  ;;  %v1764_v12 = vpop.permute.xlu0 %1763 }
 0x4b4   : > { %v1817_v55 = vmul.f32 %v1764_v12, %v1721_v18 }
 0x4b5   : > { %1834 = vst [vmem:[%s3349_s12 + $0x38] sm:$0xff] %v1818_v6 }
 0x4b6   : > { %1833 = vst [vmem:[%s3349_s12 + $0x30] sm:$0xff] %v1817_v55  ;;  %v1779_v5 = vpop.permute.xlu1 %1778 }
 0x4b7   : > { %v1820_v4 = vmul.f32 %v1779_v5, %v1724_v28  ;;  %v1774_v38 = vpop.permute.xlu0 %1773 }
 0x4b8   : > { %v1819_v1 = vmul.f32 %v1774_v38, %v1723_v58 }
 0x4b9   : > { %1836 = vst [vmem:[%s3349_s12 + $0x48] sm:$0xff] %v1820_v4 }
 0x4ba   : > { %1835 = vst [vmem:[%s3349_s12 + $0x40] sm:$0xff] %v1819_v1  ;;  %v1789_v0 = vpop.permute.xlu1 %1788 }
 0x4bb   : > { %v1822_v50 = vmul.f32 %v1789_v0, %v1726_v20  ;;  %v1784_v24 = vpop.permute.xlu0 %1783 }
 0x4bc   : > { %v1821_v61 = vmul.f32 %v1784_v24, %v1725_v34 }
 0x4bd   : > { %1838 = vst [vmem:[%s3349_s12 + $0x58] sm:$0xff] %v1822_v50 }
 0x4be   : > { %1837 = vst [vmem:[%s3349_s12 + $0x50] sm:$0xff] %v1821_v61  ;;  %v1799_v57 = vpop.permute.xlu1 %1798 }
 0x4bf   : > { %v1824_v56 = vmul.f32 %v1799_v57, %v1728_v10  ;;  %v1794_v49 = vpop.permute.xlu0 %1793 }
 0x4c0   : > { %v1823_v27 = vmul.f32 %v1794_v49, %v1727_v32 }
 0x4c1   : > { %1840 = vst [vmem:[%s3349_s12 + $0x68] sm:$0xff] %v1824_v56 }
 0x4c2   : > { %1839 = vst [vmem:[%s3349_s12 + $0x60] sm:$0xff] %v1823_v27  ;;  %v1809_v29 = vpop.permute.xlu1 %1808 }
 0x4c3   : > { %v1826_v13 = vmul.f32 %v1809_v29, %v1730_v36  ;;  %v1804_v48 = vpop.permute.xlu0 %1803 }
 0x4c4   : > { %v1825_v35 = vmul.f32 %v1804_v48, %v1729_v63 }
 0x4c5   : > { %1842 = vst [vmem:[%s3349_s12 + $0x78] sm:$0xff] %v1826_v13 }
 0x4c6   : > { %1841 = vst [vmem:[%s3349_s12 + $0x70] sm:$0xff] %v1825_v35 }
 0x4c7 PF: > { %s4400_s2 = sld [smem:[#allocation25_spill]]  ;;  %s1865_s13 = sshll.u32 %s3349_s12, 4  ;;  %s4159_s13 = int_to_ptr.vmem [resolvable:$true] %s1865_s13 }
 0x4c8   : > { %s4401_s11 = sld [smem:[#allocation26_spill]]  ;;  %s1844_s20 = scalar_lea.sflag [#allocation7], %s3327_s24 }
 0x4c9   : > { %s4402_s10 = sld [smem:[#allocation27_spill]]  ;;  %s2769_s21 = scalar_lea.vmem %s4159_s13, 2048 }
 0x4ca   : > { %s4403_s14 = sld [smem:[#allocation37_spill]]  ;;  %p2770_p13 = scmp.ne.s32.totalorder %s4159_s13, %s2769_s21 }
 0x4cb   : > { %s4404_s28 = sld [smem:[#allocation47_spill]]  ;;  %s2995_s16 = smov [#allocation11]  }
 0x4cd   : > { %s2103_s3 = sshll.u32 %s4400_s2, 6  ;;  %s2773_s2 = sshll.u32 %s2995_s16, 4  ;;  %s2774_s2 = int_to_ptr.vmem [resolvable:$false] %s2773_s2 }
 0x4ce   : > { %s1860_s26 = sadd.s32 %s4401_s11, %s2103_s3  ;;  %s2775_s12 = scalar_lea.vmem %s2774_s2, 4096 }
 0x4cf   : > { %s2094_s0 = sshll.u32 %s4402_s10, 7  ;;  %p2776_p6 = scmp.lt.s32.totalorder %s4159_s13, %s2774_s2 }
 0x4d0   : > { %s1862_s19 = sadd.s32 %s2094_s0, %s1860_s26  ;;  %p4406_p9 = scmp.ne.s32.totalorder %s4403_s14, 0 }
 0x4d1   : > { %s2095_s4 = sshll.u32 %s1862_s19, 7  ;;  %s4405_s8 = smov %s4404_s28 }
 0x4d2   : > { %s4164_s27 = scalar_lea.hbm %s4404_s28, %s2095_s4  ;;  %p2771_p10 = pnand %p2770_p13, %p4406_p9 }
 0x4d3   : > { %p2777_p2 = scmp.lt.s32.totalorder %s2775_s12, %s2769_s21 }
 0x4d4   : > { %p2772_p3 = pneg %p2771_p10 }
 0x4d5   : > { %p2778_p1 = por %p2777_p2, %p2776_p6 }
 0x4d7   : > { %p2779_p4 = pnand %p2778_p1, %p2772_p3 }
 0x4d9   : > { %2782 = shalt.err (!%p2779_p4)
}
 0x4da   : > { %s2783_s3 = scalar_lea.hbm %s4164_s27, 2048  ;;  %s2787_s19 = scalar_lea.hbm %s4405_s8, 32768 }
 0x4db   : > { %p2784_p5 = scmp.ne.s32.totalorder %s4164_s27, %s2783_s3  ;;  %p2788_p7 = scmp.lt.s32.totalorder %s4164_s27, %s4405_s8 }
 0x4dc   : > { %p2789_p0 = scmp.lt.s32.totalorder %s2787_s19, %s2783_s3 }
 0x4dd   : > { %p2785_p8 = pnand %p2784_p5, %p4406_p9 }
 0x4de   : > { %p2790_p11 = por %p2789_p0, %p2788_p7 }
 0x4df   : > { %p2786_p12 = pneg %p2785_p8 }
 0x4e1   : > { %p2791_p13 = pnand %p2790_p11, %p2786_p12 }
 0x4e3   : > { %2794 = shalt.err (!%p2791_p13)
}
 0x4e4   : > { %s2996_s9 = smov 128   ;;  %s4407_s28 = sld [smem:[#allocation19_spill]] }
 0x4e5   : > { %s4408_s21 = sld [smem:[#allocation41_spill]]  ;;  %s2997_s16 = smov 512  }
 0x4e6   : > { %s2998_s2 = smov 8   ;;  %s2096_s12 = sshll.u32 %s4402_s10, 2 }
 0x4e7   : > { %2372 = dma.vmem_to_hbm [thread:$0]  (%p4406_p9), %s4159_s13, 2048, %s4164_s27, %s1844_s20, %s2996_s9, %s2997_s16, %s2998_s2  }
 0x4e8   : > { %s1879_s3 = sadd.s32 %s4401_s11, %s2096_s12  ;;  %s1883_s26 = sshll.u32 %s3353_s25, 4  ;;  %s1884_s26 = int_to_ptr.vmem [resolvable:$true] %s1883_s26 }
 0x4e9   : > { %s2097_s0 = sshll.u32 %s1879_s3, 4  ;;  %s4409_s15 = sld [smem:[#allocation48_spill]] }
 0x4ea   : > { %s4411_s5 = sand.u32 1, %s4407_s28   ;;  %s2795_s29 = scalar_lea.vmem %s1884_s26, 16 }
 0x4eb   : > { %s1849_s30 = scalar_lea.sflag [#allocation13], %s4411_s5  ;;  %p2796_p10 = scmp.ne.s32.totalorder %s1884_s26, %s2795_s29 }
 0x4ec   : > { %p4412_p3 = scmp.ne.s32.totalorder %s4408_s21, 0  ;;  %s2999_s22 = smov [#allocation12]  }
 0x4ed   : > { %s2799_s14 = sshll.u32 %s2999_s22, 4  ;;  %s2800_s14 = int_to_ptr.vmem [resolvable:$false] %s2799_s14 }
 0x4ee   : > { %p2797_p6 = pnand %p2796_p10, %p4412_p3  ;;  %s2801_s24 = scalar_lea.vmem %s2800_s14, 32 }
 0x4ef   : > { %s4410_s18 = smov %s4409_s15  ;;  %s1881_s8 = scalar_lea.hbm %s4409_s15, %s2097_s0 }
 0x4f0   : > { %p2798_p2 = pneg %p2797_p6  ;;  %p2802_p9 = scmp.lt.s32.totalorder %s1884_s26, %s2800_s14 }
 0x4f1   : > { %p2803_p1 = scmp.lt.s32.totalorder %s2801_s24, %s2795_s29 }
 0x4f3   : > { %p2804_p4 = por %p2803_p1, %p2802_p9 }
 0x4f5   : > { %p2805_p5 = pnand %p2804_p4, %p2798_p2 }
 0x4f7   : > { %2808 = shalt.err (!%p2805_p5)
}
 0x4f8   : > { %s2809_s25 = scalar_lea.hbm %s1881_s8, 16  ;;  %s2813_s10 = scalar_lea.hbm %s4410_s18, 128 }
 0x4f9   : > { %p2810_p8 = scmp.ne.s32.totalorder %s1881_s8, %s2809_s25  ;;  %p2814_p0 = scmp.lt.s32.totalorder %s1881_s8, %s4410_s18 }
 0x4fa   : > { %p2815_p11 = scmp.lt.s32.totalorder %s2813_s10, %s2809_s25 }
 0x4fb   : > { %p2811_p12 = pnand %p2810_p8, %p4412_p3 }
 0x4fc   : > { %p2816_p13 = por %p2815_p11, %p2814_p0 }
 0x4fd   : > { %p2812_p7 = pneg %p2811_p12 }
 0x4ff   : > { %p2817_p10 = pnand %p2816_p13, %p2812_p7 }
 0x501   : > { %2820 = shalt.err (!%p2817_p10)
}
 0x502   : > { %2373 = dma.vmem_to_hbm [thread:$0]  (%p4412_p3), %s1884_s26, 16, %s1881_s8, %s1849_s30  }
 0x503 PF: > { %s4413_s22 = sld [smem:[#allocation22_spill]]  ;;  %p2394_p6 = scmp.ge.s32.totalorder %s2979_s6, 2 }
 0x504   : > { %s4414_s29 = sld [smem:[#allocation39_spill]] }
 0x509   : > { %s1895_s20 = sand.u32 1, %s4413_s22  }
 0x50a   : > { %p4415_p2 = scmp.ne.s32.totalorder %s4414_s29, 0  ;;  %s1896_s9 = scalar_lea.sflag [#allocation7], %s1895_s20 }
 0x50c   : > { %p2387_p9 = pnand %p2394_p6, %p4415_p2 }
 0x50e   : > { %p2388_p1 = pneg %p2387_p9 }
 0x510   : > { %2902 = dma.done.wait (%p2388_p1), %s1896_s9, 2048  }
 0x511   : > { %2904 = vsyncadd (%p2388_p1), %s1896_s9, 4294965248  ;;  %s4416_s28 = sld [smem:[#allocation18_spill]] }
 0x512   : > { %s4417_s16 = sld [smem:[#allocation42_spill]] }
 0x517   : > { %s1904_s2 = sand.u32 1, %s4416_s28  }
 0x518   : > { %p4418_p4 = scmp.ne.s32.totalorder %s4417_s16, 0  ;;  %s1905_s21 = scalar_lea.sflag [#allocation13], %s1904_s2 }
 0x51a   : > { %p2390_p5 = pnand %p2394_p6, %p4418_p4 }
 0x51c   : > { %p2391_p8 = pneg %p2390_p5 }
 0x51e   : > { %2906 = dma.done.wait (%p2391_p8), %s1905_s21, 16  }
 0x51f   : > { %2908 = vsyncadd (%p2391_p8), %s1905_s21, 4294967280  ;;  %s27_s6 = sadd.s32 1, %s2979_s6   ;;  %s4420_s15 = sld [smem:[#allocation19_spill]] }
 0x520   : > { %p4217_p3 = scmp.ge.s32.totalorder %s27_s6, 34   ;;  %s4421_s8 = sld [smem:[#allocation20_spill]] }
 0x521   : > { %s4422_s19 = sld [smem:[#allocation21_spill]]  ;;  %s4433_s16 = smov %s2919_s17 }
 0x522   : > { %s4423_s21 = sld [smem:[#allocation23_spill]]  ;;  %s4434_s17 = smov %s3284_s7 }
 0x523   : > { %s4424_s12 = sld [smem:[#allocation43_spill]]  ;;  %s4437_s20 = smov %s4456_s1 }
 0x524   : > { %s4425_s24 = sld [smem:[#allocation28_spill]]  ;;  %s4438_s22 = smov %s2943_s23 }
 0x525   : > { %s4426_s25 = sld [smem:[#allocation29_spill]] }
 0x526   : > { %s4427_s26 = sld [smem:[#allocation30_spill]] }
 0x527   : > { %s4428_s27 = sld [smem:[#allocation31_spill]] }
 0x528   : > { %s4429_s28 = sld [smem:[#allocation33_spill]] }
 0x529   : > { %s4430_s29 = sld [smem:[#allocation35_spill]]  ;;  %s4439_s23 = smov %s4424_s12 }
 0x52a   : > { %s4431_s3 = sld [smem:[#allocation38_spill]] }
 0x52b   : > { %s4432_s5 = sld [smem:[#allocation40_spill]] }
 0x52c   : > { %4436 = sst [smem:[#allocation18_spill]] %s4421_s8  ;;  %26 = sbr.rel (!%p4217_p3) target bundleno = 23 (0x17), region = 130 }
 0x530   : > { %s4440_s30 = smov %s4431_s3 }
 0x531   :  { %1909 = vsyncpa [#allocation6], 1 }
 0x532   :  { %1911 = vsyncpa [#allocation6 + $0x1], 1 }
 0x533   :  { %1912 = vsyncpa [#allocation9], 1 }
 0x534   :  { %1914 = vsyncpa [#allocation9 + $0x1], 1 }
 0x535   :  { %1915 = vsyncpa [#allocation7], 1 }
 0x536   :  { %1917 = vsyncpa [#allocation7 + $0x1], 1 }
 0x537   :  { %1918 = vsyncpa [#allocation13], 1 }
 0x538   :  { %1920 = vsyncpa [#allocation13 + $0x1], 1 }

</bundles_post_ra>
